<compile_context>
chip_gen: v6e
topology: v6e:2x2x1
jax: 0.10.0
libtpu: 0.0.40
codegen_flags: <defaults>
</compile_context>

<pallas_src>
import jax
import jax.numpy as jnp
import numpy as np
from jax import lax
from jax.experimental import pallas as pl
from jax.experimental.pallas import tpu as pltpu


def _round_up(x, m):
    return ((x + m - 1) // m) * m


# ---------------------------------------------------------------------------
# Kernel 1: LSTM recurrence.  One grid step == t_chunk timesteps.
# h/c carried across the sequential ("arbitrary") time grid in VMEM scratch.
# Emits h time-major (t_pad, b_pad, H) in bf16 (full-sublane per-step stores).
# ---------------------------------------------------------------------------
def _make_lstm_kernel(t_chunk, t_live, n_chunks, hidden):
    def kernel(x_ref, wih_ref, whh_ref, b_ref, h_out_ref, h_sc, c_sc):
        @pl.when(pl.program_id(0) == 0)
        def _init():
            h_sc[...] = jnp.zeros_like(h_sc)
            c_sc[...] = jnp.zeros_like(c_sc)

        b_pad = x_ref.shape[1]
        embed = x_ref.shape[2]
        w_hh = whh_ref[...]                                   # (H, 4H) bf16, resident

        # Hoisted input matmul: the whole chunk at once (M = t_chunk*b_pad),
        # bias folded in.  Only h @ W_hh remains on the serial chain below.
        x_flat = x_ref[...].reshape(t_chunk * b_pad, embed)   # bf16
        gates_x = (jnp.dot(x_flat, wih_ref[...],
                           preferred_element_type=jnp.float32)
                   + b_ref[...])                              # (t_chunk*b_pad, 4H) f32
        gates_x = gates_x.reshape(t_chunk, b_pad, 4 * hidden)

        def cell(t, h, c):
            # PyTorch gate order along the fused 4H axis: i, f, g, o.
            gates = gates_x[t] + jnp.dot(h.astype(jnp.bfloat16), w_hh,
                                         preferred_element_type=jnp.float32)
            i_g = jax.nn.sigmoid(gates[:, 0 * hidden:1 * hidden])
            f_g = jax.nn.sigmoid(gates[:, 1 * hidden:2 * hidden])
            g_g = jnp.tanh(gates[:, 2 * hidden:3 * hidden])
            o_g = jax.nn.sigmoid(gates[:, 3 * hidden:4 * hidden])
            c = f_g * c + i_g * g_g
            h = o_g * jnp.tanh(c)
            h_out_ref[t] = h.astype(h_out_ref.dtype)          # full-sublane store
            return h, c

        h = h_sc[...]                                         # (b_pad, H) f32 state
        c = c_sc[...]

        # Steps that are valid in EVERY chunk (register-carried, fully unrolled).
        for t in range(t_live):
            h, c = cell(t, h, c)
        h_sc[...] = h
        c_sc[...] = c

        # Steps that are padding in the last chunk only: run them for non-last
        # chunks, skip them on the last one (no wasted serial work on the tail).
        if t_live < t_chunk and n_chunks > 1:
            @pl.when(pl.program_id(0) < n_chunks - 1)
            def _full_chunk_tail():
                h2 = h_sc[...]
                c2 = c_sc[...]
                for t in range(t_live, t_chunk):
                    h2, c2 = cell(t, h2, c2)
                h_sc[...] = h2
                c_sc[...] = c2

    return kernel


def _lstm_recurrence(x_tbe, w_ih_f, w_hh_f, b_f, *, seq, t_chunk, b_pad, t_pad, h_pad):
    embed = x_tbe.shape[-1]
    n_chunks = t_pad // t_chunk
    t_live = seq - (n_chunks - 1) * t_chunk                   # valid steps in last chunk
    kernel = _make_lstm_kernel(t_chunk, t_live, n_chunks, h_pad)
    return pl.pallas_call(
        kernel,
        out_shape=jax.ShapeDtypeStruct((t_pad, b_pad, h_pad), jnp.bfloat16),
        grid_spec=pltpu.PrefetchScalarGridSpec(
            num_scalar_prefetch=0,
            grid=(n_chunks,),
            in_specs=[
                pl.BlockSpec((t_chunk, b_pad, embed), lambda i: (i, 0, 0)),   # x chunk
                pl.BlockSpec((embed, 4 * h_pad), lambda i: (0, 0)),           # W_ih fused
                pl.BlockSpec((h_pad, 4 * h_pad), lambda i: (0, 0)),           # W_hh fused
                pl.BlockSpec((1, 4 * h_pad), lambda i: (0, 0)),               # b_ih+b_hh
            ],
            out_specs=pl.BlockSpec((t_chunk, b_pad, h_pad), lambda i: (i, 0, 0)),
            scratch_shapes=[
                pltpu.VMEM((b_pad, h_pad), jnp.float32),      # h carry
                pltpu.VMEM((b_pad, h_pad), jnp.float32),      # c carry
            ],
        ),
        compiler_params=pltpu.CompilerParams(
            dimension_semantics=("arbitrary",),
            vmem_limit_bytes=32 * 1024 * 1024,
        ),
    )(x_tbe, w_ih_f, w_hh_f, b_f)


# ---------------------------------------------------------------------------
# Kernel 2: hoisted output projection.  Single (B*T_pad, H) @ (H, v_tile)
# matmul per vocab tile; writes (B, T_pad, V) directly (lane-dense stores).
# ---------------------------------------------------------------------------
def _proj_kernel(h_ref, w_ref, b_ref, out_ref):
    batch, t_pad, h_pad = h_ref.shape
    h2 = h_ref[...].reshape(batch * t_pad, h_pad)             # bf16, layout-clean
    acc = jnp.dot(h2, w_ref[...], preferred_element_type=jnp.float32) + b_ref[...]
    out_ref[...] = acc.reshape(out_ref.shape).astype(out_ref.dtype)


def _output_projection(h_bth, w_out_p, b_out_p, *, v_tile):
    batch, t_pad, h_pad = h_bth.shape
    v_pad = w_out_p.shape[-1]
    return pl.pallas_call(
        _proj_kernel,
        out_shape=jax.ShapeDtypeStruct((batch, t_pad, v_pad), jnp.float32),
        grid_spec=pltpu.PrefetchScalarGridSpec(
            num_scalar_prefetch=0,
            grid=(v_pad // v_tile,),
            in_specs=[
                pl.BlockSpec((batch, t_pad, h_pad), lambda j: (0, 0, 0)),     # h resident
                pl.BlockSpec((h_pad, v_tile), lambda j: (0, j)),              # W_out tile
                pl.BlockSpec((1, v_tile), lambda j: (0, j)),                  # b_out tile
            ],
            out_specs=pl.BlockSpec((batch, t_pad, v_tile), lambda j: (0, 0, j)),
        ),
        compiler_params=pltpu.CompilerParams(
            dimension_semantics=("parallel",),
            vmem_limit_bytes=32 * 1024 * 1024,
        ),
    )(h_bth, w_out_p, b_out_p)


# ---------------------------------------------------------------------------
# DecoderRNN forward: embedding lookup + feature concat in plain JAX (a gather,
# not the compute hot path); LSTM recurrence + linear head in Pallas.
# ---------------------------------------------------------------------------
def decoder_rnn_forward(params, features, captions, *, t_chunk=16, v_tile=512):
    cap = captions[:, :-1]
    embed = jnp.take(params["emb"], cap, axis=0)                 # (B, Tc-1, E)
    x = jnp.concatenate([features[:, None, :], embed], axis=1)   # (B, T, E)
    batch, seq, embed_size = x.shape
    hidden = params["w_hh"].shape[-1]
    vocab = params["w_out"].shape[-1]

    b_pad = _round_up(batch, 16)         # bf16 vregs pack [16,128] sublanes
    h_pad = _round_up(hidden, 128)       # lane-tile-aligned i|f|g|o gate slices
    t_pad = _round_up(seq, t_chunk)
    v_pad = _round_up(vocab, 128)        # lane-dense logits stores
    v_tile = min(v_tile, v_pad)
    if v_pad % v_tile != 0:
        v_tile = 128                     # v_pad is always a multiple of 128
    pad_h = h_pad - hidden

    # Time-major, padded LSTM input; bf16 for the MXU.
    x_tbe = jnp.transpose(x, (1, 0, 2)).astype(jnp.float32)
    x_tbe = jnp.pad(x_tbe, ((0, t_pad - seq), (0, b_pad - batch), (0, 0)))
    x_tbe = x_tbe.astype(jnp.bfloat16)

    # Fused gate weights: (4,E,H)->(E,4H_pad), (4,H,H)->(H_pad,4H_pad),
    # (4,1,H)->(1,4H_pad); gate order i|f|g|o along the 4H axis.  Zero padding
    # of the hidden lanes keeps padded h/c exactly zero through the recurrence.
    # NOTE: raw PyTorch nn.LSTM checkpoints store weight_ih_l0 as (4H, E) --
    # transpose/split when importing real weights (make_params already matches).
    w_ih_f = jnp.transpose(jnp.pad(params["w_ih"], ((0, 0), (0, 0), (0, pad_h))),
                           (1, 0, 2)).reshape(embed_size, 4 * h_pad).astype(jnp.bfloat16)
    w_hh_f = jnp.transpose(jnp.pad(params["w_hh"], ((0, 0), (0, pad_h), (0, pad_h))),
                           (1, 0, 2)).reshape(h_pad, 4 * h_pad).astype(jnp.bfloat16)
    b_f = jnp.transpose(jnp.pad(params["b_gates"], ((0, 0), (0, 0), (0, pad_h))),
                        (1, 0, 2)).reshape(1, 4 * h_pad).astype(jnp.float32)

    # Output head, hidden rows and vocab cols padded.
    w_out_p = jnp.pad(params["w_out"], ((0, pad_h), (0, v_pad - vocab))).astype(jnp.bfloat16)
    b_out_p = jnp.pad(params["b_out"], ((0, 0), (0, v_pad - vocab))).astype(jnp.float32)

    h_tbh = _lstm_recurrence(x_tbe, w_ih_f, w_hh_f, b_f,
                             seq=seq, t_chunk=t_chunk, b_pad=b_pad,
                             t_pad=t_pad, h_pad=h_pad)           # (T_pad,B_pad,H) bf16
    # h is small: transpose here (and drop padded batch rows) so the big logits
    # tensor is written batch-first directly and never transposed in HBM.
    h_bth = jnp.transpose(h_tbh, (1, 0, 2))[:batch]              # (B, T_pad, H) bf16
    logits = _output_projection(h_bth, w_out_p, b_out_p, v_tile=v_tile)
    return logits[:, :seq, :vocab]                               # (B, T, V)


# ---------------------------------------------------------------------------
# Pure-JAX f32 reference (lax.scan) for correctness checking.
# ---------------------------------------------------------------------------
def decoder_rnn_reference(params, features, captions):
    cap = captions[:, :-1]
    embed = jnp.take(params["emb"], cap, axis=0)
    x = jnp.concatenate([features[:, None, :], embed], axis=1)   # (B, T, E)
    batch = x.shape[0]
    hidden = params["w_hh"].shape[-1]

    def step(carry, x_t):
        h, c = carry
        gates = [jnp.dot(x_t, params["w_ih"][k]) + jnp.dot(h, params["w_hh"][k])
                 + params["b_gates"][k] for k in range(4)]
        i_g = jax.nn.sigmoid(gates[0])
        f_g = jax.nn.sigmoid(gates[1])
        g_g = jnp.tanh(gates[2])
        o_g = jax.nn.sigmoid(gates[3])
        c_new = f_g * c + i_g * g_g
        h_new = o_g * jnp.tanh(c_new)
        return (h_new, c_new), h_new

    h0 = jnp.zeros((batch, hidden), jnp.float32)
    c0 = jnp.zeros((batch, hidden), jnp.float32)
    _, hs = lax.scan(step, (h0, c0), jnp.transpose(x, (1, 0, 2)))
    out = jnp.einsum("tbh,hv->tbv", hs, params["w_out"]) + params["b_out"]
    return jnp.transpose(out, (1, 0, 2))


# ---------------------------------------------------------------------------
# Deterministic parameter construction (PyTorch-style shapes, gate order ifgo).
# ---------------------------------------------------------------------------
def make_params(key, embed_size, hidden_size, vocab_size):
    ks = jax.random.split(key, 7)
    bound = 1.0 / np.sqrt(hidden_size)
    u = lambda k, shape: jax.random.uniform(k, shape, jnp.float32, -bound, bound)

    emb = jax.random.normal(ks[0], (vocab_size, embed_size), jnp.float32)
    w_ih = u(ks[1], (4, embed_size, hidden_size))   # per-gate, transposed for x @ W
    w_hh = u(ks[2], (4, hidden_size, hidden_size))
    b_ih = u(ks[3], (4, 1, hidden_size))
    b_hh = u(ks[4], (4, 1, hidden_size))
    w_out = u(ks[5], (hidden_size, vocab_size))     # nn.Linear weight, transposed
    b_out = u(ks[6], (1, vocab_size))

    return {
        "emb": emb,
        "w_ih": w_ih,
        "w_hh": w_hh,
        "b_gates": b_ih + b_hh,
        "w_out": w_out,
        "b_out": b_out,
    }


if __name__ == "__main__":
    batch = 2
    embed_size = 32
    hidden_size = 32
    vocab_size = 128
    cap_len = 9          # T = (cap_len-1 embeddings) + 1 image feature = 9 steps

    key = jax.random.PRNGKey(0)
    k_par, k_feat, k_cap = jax.random.split(key, 3)

    params = make_params(k_par, embed_size, hidden_size, vocab_size)
    features = jax.random.normal(k_feat, (batch, embed_size), jnp.float32)
    captions = jax.random.randint(k_cap, (batch, cap_len), 0, vocab_size, jnp.int32)

    fwd = jax.jit(decoder_rnn_forward)
    out = jax.block_until_ready(fwd(params, features, captions))
    ref = jax.block_until_ready(decoder_rnn_reference(params, features, captions))

    assert out.shape == (batch, cap_len, vocab_size), out.shape
    # Tolerance covers bf16 rounding of MXU inputs (f32 accumulation); at long
    # sequence lengths validate recurrent bf16-h drift separately.
    np.testing.assert_allclose(np.asarray(out), np.asarray(ref), rtol=5e-2, atol=5e-2)

    print("KERNEL_OK")
</pallas_src>

<mosaic_0001>
module attributes {stable_mosaic.version = 11 : i64} {
  func.func @kernel(%arg0: i32, %arg1: memref<16x16x32xbf16, #tpu.memory_space<vmem>>, %arg2: memref<32x512xbf16, #tpu.memory_space<vmem>>, %arg3: memref<128x512xbf16, #tpu.memory_space<vmem>>, %arg4: memref<1x512xf32, #tpu.memory_space<vmem>>, %arg5: memref<16x16x128xbf16, #tpu.memory_space<vmem>>, %arg6: memref<16x128xf32, #tpu.memory_space<vmem>>, %arg7: memref<16x128xf32, #tpu.memory_space<vmem>>) attributes {dimension_semantics = [#tpu.dimension_semantics<arbitrary>], iteration_bounds = array<i64: 1>, scalar_prefetch = 0 : i64, scratch_operands = 2 : i64, tpu.core_type = #tpu.core_type<tc>, window_params = [{transform_indices = @transform_0, window_bounds = array<i64: 16, 16, 32>}, {pipeline_mode = #tpu.pipeline_mode<synchronous>, transform_indices = @transform_1, window_bounds = array<i64: 32, 512>}, {pipeline_mode = #tpu.pipeline_mode<synchronous>, transform_indices = @transform_2, window_bounds = array<i64: 128, 512>}, {pipeline_mode = #tpu.pipeline_mode<synchronous>, transform_indices = @transform_3, window_bounds = array<i64: 1, 512>}, {transform_indices = @transform_4, window_bounds = array<i64: 16, 16, 128>}]} {
    %c0_i32 = arith.constant 0 : i32
    %0 = arith.cmpi eq, %arg0, %c0_i32 : i32
    %1 = arith.extui %0 : i1 to i32
    %c0_i32_0 = arith.constant 0 : i32
    %2 = arith.cmpi ne, %1, %c0_i32_0 : i32
    scf.if %2 {
      %cst_72 = arith.constant 0.000000e+00 : f32
      %322 = vector.broadcast %cst_72 : f32 to vector<16x128xf32>
      %c0_73 = arith.constant 0 : index
      %c0_74 = arith.constant 0 : index
      %323 = vector.load %arg6[%c0_73, %c0_74] : memref<16x128xf32, #tpu.memory_space<vmem>>, vector<16x128xf32>
      tpu.vector_store %arg6[%c0_73, %c0_74], %322 {strides = array<i32>} : memref<16x128xf32, #tpu.memory_space<vmem>>, vector<16x128xf32>,
      %cst_75 = arith.constant 0.000000e+00 : f32
      %324 = vector.broadcast %cst_75 : f32 to vector<16x128xf32>
      %c0_76 = arith.constant 0 : index
      %c0_77 = arith.constant 0 : index
      %325 = vector.load %arg7[%c0_76, %c0_77] : memref<16x128xf32, #tpu.memory_space<vmem>>, vector<16x128xf32>
      tpu.vector_store %arg7[%c0_76, %c0_77], %324 {strides = array<i32>} : memref<16x128xf32, #tpu.memory_space<vmem>>, vector<16x128xf32>,
    } else {
    }
    %c0 = arith.constant 0 : index
    %c0_1 = arith.constant 0 : index
    %3 = vector.load %arg3[%c0, %c0_1] : memref<128x512xbf16, #tpu.memory_space<vmem>>, vector<128x512xbf16>
    %c0_2 = arith.constant 0 : index
    %c0_3 = arith.constant 0 : index
    %c0_4 = arith.constant 0 : index
    %4 = vector.load %arg1[%c0_2, %c0_3, %c0_4] : memref<16x16x32xbf16, #tpu.memory_space<vmem>>, vector<16x16x32xbf16>
    %5 = vector.shape_cast %4 : vector<16x16x32xbf16> to vector<256x32xbf16>
    %c0_5 = arith.constant 0 : index
    %c0_6 = arith.constant 0 : index
    %6 = vector.load %arg2[%c0_5, %c0_6] : memref<32x512xbf16, #tpu.memory_space<vmem>>, vector<32x512xbf16>
    %cst = arith.constant dense<0.000000e+00> : vector<256x512xf32>
    %7 = tpu.matmul %5, %6, %cst {dimension_numbers = #tpu.dot_dimension_numbers<[1], [0], [0], [1], [0, 0, 1, 1], [], []>} : vector<256x32xbf16>, vector<32x512xbf16>, vector<256x512xf32> -> vector<256x512xf32>
    %c0_7 = arith.constant 0 : index
    %c0_8 = arith.constant 0 : index
    %8 = vector.load %arg4[%c0_7, %c0_8] : memref<1x512xf32, #tpu.memory_space<vmem>>, vector<1x512xf32>
    %9 = vector.broadcast %8 : vector<1x512xf32> to vector<256x512xf32>
    %10 = arith.addf %7, %9 : vector<256x512xf32>
    %11 = vector.shape_cast %10 : vector<256x512xf32> to vector<16x16x512xf32>
    %c0_9 = arith.constant 0 : index
    %c0_10 = arith.constant 0 : index
    %12 = vector.load %arg6[%c0_9, %c0_10] : memref<16x128xf32, #tpu.memory_space<vmem>>, vector<16x128xf32>
    %c0_11 = arith.constant 0 : index
    %c0_12 = arith.constant 0 : index
    %13 = vector.load %arg7[%c0_11, %c0_12] : memref<16x128xf32, #tpu.memory_space<vmem>>, vector<16x128xf32>
    %14 = vector.extract_strided_slice %11 {offsets = [0, 0, 0], sizes = [1, 16, 512], strides = [1, 1, 1]} : vector<16x16x512xf32> to vector<1x16x512xf32>
    %15 = vector.shape_cast %14 : vector<1x16x512xf32> to vector<16x512xf32>
    %16 = arith.truncf %12 : vector<16x128xf32> to vector<16x128xbf16>
    %cst_13 = arith.constant dense<0.000000e+00> : vector<16x512xf32>
    %17 = tpu.matmul %16, %3, %cst_13 {dimension_numbers = #tpu.dot_dimension_numbers<[1], [0], [0], [1], [0, 0, 1, 1], [], []>} : vector<16x128xbf16>, vector<128x512xbf16>, vector<16x512xf32> -> vector<16x512xf32>
    %18 = arith.addf %15, %17 : vector<16x512xf32>
    %19 = vector.extract_strided_slice %18 {offsets = [0, 0], sizes = [16, 128], strides = [1, 1]} : vector<16x512xf32> to vector<16x128xf32>
    %20 = arith.negf %19 : vector<16x128xf32>
    %21 = math.exp %20 : vector<16x128xf32>
    %cst_14 = arith.constant 1.000000e+00 : f32
    %22 = vector.broadcast %cst_14 : f32 to vector<16x128xf32>
    %23 = arith.addf %22, %21 : vector<16x128xf32>
    %24 = arith.divf %22, %23 : vector<16x128xf32>
    %25 = vector.extract_strided_slice %18 {offsets = [0, 128], sizes = [16, 128], strides = [1, 1]} : vector<16x512xf32> to vector<16x128xf32>
    %26 = arith.negf %25 : vector<16x128xf32>
    %27 = math.exp %26 : vector<16x128xf32>
    %cst_15 = arith.constant 1.000000e+00 : f32
    %28 = vector.broadcast %cst_15 : f32 to vector<16x128xf32>
    %29 = arith.addf %28, %27 : vector<16x128xf32>
    %30 = arith.divf %28, %29 : vector<16x128xf32>
    %31 = vector.extract_strided_slice %18 {offsets = [0, 256], sizes = [16, 128], strides = [1, 1]} : vector<16x512xf32> to vector<16x128xf32>
    %32 = math.tanh %31 : vector<16x128xf32>
    %33 = vector.extract_strided_slice %18 {offsets = [0, 384], sizes = [16, 128], strides = [1, 1]} : vector<16x512xf32> to vector<16x128xf32>
    %34 = arith.negf %33 : vector<16x128xf32>
    %35 = math.exp %34 : vector<16x128xf32>
    %cst_16 = arith.constant 1.000000e+00 : f32
    %36 = vector.broadcast %cst_16 : f32 to vector<16x128xf32>
    %37 = arith.addf %36, %35 : vector<16x128xf32>
    %38 = arith.divf %36, %37 : vector<16x128xf32>
    %39 = arith.mulf %30, %13 : vector<16x128xf32>
    %40 = arith.mulf %24, %32 : vector<16x128xf32>
    %41 = arith.addf %39, %40 : vector<16x128xf32>
    %42 = math.tanh %41 : vector<16x128xf32>
    %43 = arith.mulf %38, %42 : vector<16x128xf32>
    %44 = arith.truncf %43 : vector<16x128xf32> to vector<16x128xbf16>
    %c0_17 = arith.constant 0 : index
    %c0_18 = arith.constant 0 : index
    %c0_19 = arith.constant 0 : index
    %45 = vector.load %arg5[%c0_17, %c0_18, %c0_19] : memref<16x16x128xbf16, #tpu.memory_space<vmem>>, vector<1x16x128xbf16>
    %46 = vector.shape_cast %45 : vector<1x16x128xbf16> to vector<16x128xbf16>
    %47 = vector.shape_cast %44 : vector<16x128xbf16> to vector<1x16x128xbf16>
    tpu.vector_store %arg5[%c0_17, %c0_18, %c0_19], %47 {strides = array<i32>} : memref<16x16x128xbf16, #tpu.memory_space<vmem>>, vector<1x16x128xbf16>,
    %48 = vector.extract_strided_slice %11 {offsets = [1, 0, 0], sizes = [1, 16, 512], strides = [1, 1, 1]} : vector<16x16x512xf32> to vector<1x16x512xf32>
    %49 = vector.shape_cast %48 : vector<1x16x512xf32> to vector<16x512xf32>
    %50 = arith.truncf %43 : vector<16x128xf32> to vector<16x128xbf16>
    %cst_20 = arith.constant dense<0.000000e+00> : vector<16x512xf32>
    %51 = tpu.matmul %50, %3, %cst_20 {dimension_numbers = #tpu.dot_dimension_numbers<[1], [0], [0], [1], [0, 0, 1, 1], [], []>} : vector<16x128xbf16>, vector<128x512xbf16>, vector<16x512xf32> -> vector<16x512xf32>
    %52 = arith.addf %49, %51 : vector<16x512xf32>
    %53 = vector.extract_strided_slice %52 {offsets = [0, 0], sizes = [16, 128], strides = [1, 1]} : vector<16x512xf32> to vector<16x128xf32>
    %54 = arith.negf %53 : vector<16x128xf32>
    %55 = math.exp %54 : vector<16x128xf32>
    %cst_21 = arith.constant 1.000000e+00 : f32
    %56 = vector.broadcast %cst_21 : f32 to vector<16x128xf32>
    %57 = arith.addf %56, %55 : vector<16x128xf32>
    %58 = arith.divf %56, %57 : vector<16x128xf32>
    %59 = vector.extract_strided_slice %52 {offsets = [0, 128], sizes = [16, 128], strides = [1, 1]} : vector<16x512xf32> to vector<16x128xf32>
    %60 = arith.negf %59 : vector<16x128xf32>
    %61 = math.exp %60 : vector<16x128xf32>
    %cst_22 = arith.constant 1.000000e+00 : f32
    %62 = vector.broadcast %cst_22 : f32 to vector<16x128xf32>
    %63 = arith.addf %62, %61 : vector<16x128xf32>
    %64 = arith.divf %62, %63 : vector<16x128xf32>
    %65 = vector.extract_strided_slice %52 {offsets = [0, 256], sizes = [16, 128], strides = [1, 1]} : vector<16x512xf32> to vector<16x128xf32>
    %66 = math.tanh %65 : vector<16x128xf32>
    %67 = vector.extract_strided_slice %52 {offsets = [0, 384], sizes = [16, 128], strides = [1, 1]} : vector<16x512xf32> to vector<16x128xf32>
    %68 = arith.negf %67 : vector<16x128xf32>
    %69 = math.exp %68 : vector<16x128xf32>
    %cst_23 = arith.constant 1.000000e+00 : f32
    %70 = vector.broadcast %cst_23 : f32 to vector<16x128xf32>
    %71 = arith.addf %70, %69 : vector<16x128xf32>
    %72 = arith.divf %70, %71 : vector<16x128xf32>
    %73 = arith.mulf %64, %41 : vector<16x128xf32>
    %74 = arith.mulf %58, %66 : vector<16x128xf32>
    %75 = arith.addf %73, %74 : vector<16x128xf32>
    %76 = math.tanh %75 : vector<16x128xf32>
    %77 = arith.mulf %72, %76 : vector<16x128xf32>
    %78 = arith.truncf %77 : vector<16x128xf32> to vector<16x128xbf16>
    %c1 = arith.constant 1 : index
    %c0_24 = arith.constant 0 : index
    %c0_25 = arith.constant 0 : index
    %79 = vector.load %arg5[%c1, %c0_24, %c0_25] : memref<16x16x128xbf16, #tpu.memory_space<vmem>>, vector<1x16x128xbf16>
    %80 = vector.shape_cast %79 : vector<1x16x128xbf16> to vector<16x128xbf16>
    %81 = vector.shape_cast %78 : vector<16x128xbf16> to vector<1x16x128xbf16>
    tpu.vector_store %arg5[%c1, %c0_24, %c0_25], %81 {strides = array<i32>} : memref<16x16x128xbf16, #tpu.memory_space<vmem>>, vector<1x16x128xbf16>,
    %82 = vector.extract_strided_slice %11 {offsets = [2, 0, 0], sizes = [1, 16, 512], strides = [1, 1, 1]} : vector<16x16x512xf32> to vector<1x16x512xf32>
    %83 = vector.shape_cast %82 : vector<1x16x512xf32> to vector<16x512xf32>
    %84 = arith.truncf %77 : vector<16x128xf32> to vector<16x128xbf16>
    %cst_26 = arith.constant dense<0.000000e+00> : vector<16x512xf32>
    %85 = tpu.matmul %84, %3, %cst_26 {dimension_numbers = #tpu.dot_dimension_numbers<[1], [0], [0], [1], [0, 0, 1, 1], [], []>} : vector<16x128xbf16>, vector<128x512xbf16>, vector<16x512xf32> -> vector<16x512xf32>
    %86 = arith.addf %83, %85 : vector<16x512xf32>
    %87 = vector.extract_strided_slice %86 {offsets = [0, 0], sizes = [16, 128], strides = [1, 1]} : vector<16x512xf32> to vector<16x128xf32>
    %88 = arith.negf %87 : vector<16x128xf32>
    %89 = math.exp %88 : vector<16x128xf32>
    %cst_27 = arith.constant 1.000000e+00 : f32
    %90 = vector.broadcast %cst_27 : f32 to vector<16x128xf32>
    %91 = arith.addf %90, %89 : vector<16x128xf32>
    %92 = arith.divf %90, %91 : vector<16x128xf32>
    %93 = vector.extract_strided_slice %86 {offsets = [0, 128], sizes = [16, 128], strides = [1, 1]} : vector<16x512xf32> to vector<16x128xf32>
    %94 = arith.negf %93 : vector<16x128xf32>
    %95 = math.exp %94 : vector<16x128xf32>
    %cst_28 = arith.constant 1.000000e+00 : f32
    %96 = vector.broadcast %cst_28 : f32 to vector<16x128xf32>
    %97 = arith.addf %96, %95 : vector<16x128xf32>
    %98 = arith.divf %96, %97 : vector<16x128xf32>
    %99 = vector.extract_strided_slice %86 {offsets = [0, 256], sizes = [16, 128], strides = [1, 1]} : vector<16x512xf32> to vector<16x128xf32>
    %100 = math.tanh %99 : vector<16x128xf32>
    %101 = vector.extract_strided_slice %86 {offsets = [0, 384], sizes = [16, 128], strides = [1, 1]} : vector<16x512xf32> to vector<16x128xf32>
    %102 = arith.negf %101 : vector<16x128xf32>
    %103 = math.exp %102 : vector<16x128xf32>
    %cst_29 = arith.constant 1.000000e+00 : f32
    %104 = vector.broadcast %cst_29 : f32 to vector<16x128xf32>
    %105 = arith.addf %104, %103 : vector<16x128xf32>
    %106 = arith.divf %104, %105 : vector<16x128xf32>
    %107 = arith.mulf %98, %75 : vector<16x128xf32>
    %108 = arith.mulf %92, %100 : vector<16x128xf32>
    %109 = arith.addf %107, %108 : vector<16x128xf32>
    %110 = math.tanh %109 : vector<16x128xf32>
    %111 = arith.mulf %106, %110 : vector<16x128xf32>
    %112 = arith.truncf %111 : vector<16x128xf32> to vector<16x128xbf16>
    %c2 = arith.constant 2 : index
    %c0_30 = arith.constant 0 : index
    %c0_31 = arith.constant 0 : index
    %113 = vector.load %arg5[%c2, %c0_30, %c0_31] : memref<16x16x128xbf16, #tpu.memory_space<vmem>>, vector<1x16x128xbf16>
    %114 = vector.shape_cast %113 : vector<1x16x128xbf16> to vector<16x128xbf16>
    %115 = vector.shape_cast %112 : vector<16x128xbf16> to vector<1x16x128xbf16>
    tpu.vector_store %arg5[%c2, %c0_30, %c0_31], %115 {strides = array<i32>} : memref<16x16x128xbf16, #tpu.memory_space<vmem>>, vector<1x16x128xbf16>,
    %116 = vector.extract_strided_slice %11 {offsets = [3, 0, 0], sizes = [1, 16, 512], strides = [1, 1, 1]} : vector<16x16x512xf32> to vector<1x16x512xf32>
    %117 = vector.shape_cast %116 : vector<1x16x512xf32> to vector<16x512xf32>
    %118 = arith.truncf %111 : vector<16x128xf32> to vector<16x128xbf16>
    %cst_32 = arith.constant dense<0.000000e+00> : vector<16x512xf32>
    %119 = tpu.matmul %118, %3, %cst_32 {dimension_numbers = #tpu.dot_dimension_numbers<[1], [0], [0], [1], [0, 0, 1, 1], [], []>} : vector<16x128xbf16>, vector<128x512xbf16>, vector<16x512xf32> -> vector<16x512xf32>
    %120 = arith.addf %117, %119 : vector<16x512xf32>
    %121 = vector.extract_strided_slice %120 {offsets = [0, 0], sizes = [16, 128], strides = [1, 1]} : vector<16x512xf32> to vector<16x128xf32>
    %122 = arith.negf %121 : vector<16x128xf32>
    %123 = math.exp %122 : vector<16x128xf32>
    %cst_33 = arith.constant 1.000000e+00 : f32
    %124 = vector.broadcast %cst_33 : f32 to vector<16x128xf32>
    %125 = arith.addf %124, %123 : vector<16x128xf32>
    %126 = arith.divf %124, %125 : vector<16x128xf32>
    %127 = vector.extract_strided_slice %120 {offsets = [0, 128], sizes = [16, 128], strides = [1, 1]} : vector<16x512xf32> to vector<16x128xf32>
    %128 = arith.negf %127 : vector<16x128xf32>
    %129 = math.exp %128 : vector<16x128xf32>
    %cst_34 = arith.constant 1.000000e+00 : f32
    %130 = vector.broadcast %cst_34 : f32 to vector<16x128xf32>
    %131 = arith.addf %130, %129 : vector<16x128xf32>
    %132 = arith.divf %130, %131 : vector<16x128xf32>
    %133 = vector.extract_strided_slice %120 {offsets = [0, 256], sizes = [16, 128], strides = [1, 1]} : vector<16x512xf32> to vector<16x128xf32>
    %134 = math.tanh %133 : vector<16x128xf32>
    %135 = vector.extract_strided_slice %120 {offsets = [0, 384], sizes = [16, 128], strides = [1, 1]} : vector<16x512xf32> to vector<16x128xf32>
    %136 = arith.negf %135 : vector<16x128xf32>
    %137 = math.exp %136 : vector<16x128xf32>
    %cst_35 = arith.constant 1.000000e+00 : f32
    %138 = vector.broadcast %cst_35 : f32 to vector<16x128xf32>
    %139 = arith.addf %138, %137 : vector<16x128xf32>
    %140 = arith.divf %138, %139 : vector<16x128xf32>
    %141 = arith.mulf %132, %109 : vector<16x128xf32>
    %142 = arith.mulf %126, %134 : vector<16x128xf32>
    %143 = arith.addf %141, %142 : vector<16x128xf32>
    %144 = math.tanh %143 : vector<16x128xf32>
    %145 = arith.mulf %140, %144 : vector<16x128xf32>
    %146 = arith.truncf %145 : vector<16x128xf32> to vector<16x128xbf16>
    %c3 = arith.constant 3 : index
    %c0_36 = arith.constant 0 : index
    %c0_37 = arith.constant 0 : index
    %147 = vector.load %arg5[%c3, %c0_36, %c0_37] : memref<16x16x128xbf16, #tpu.memory_space<vmem>>, vector<1x16x128xbf16>
    %148 = vector.shape_cast %147 : vector<1x16x128xbf16> to vector<16x128xbf16>
    %149 = vector.shape_cast %146 : vector<16x128xbf16> to vector<1x16x128xbf16>
    tpu.vector_store %arg5[%c3, %c0_36, %c0_37], %149 {strides = array<i32>} : memref<16x16x128xbf16, #tpu.memory_space<vmem>>, vector<1x16x128xbf16>,
    %150 = vector.extract_strided_slice %11 {offsets = [4, 0, 0], sizes = [1, 16, 512], strides = [1, 1, 1]} : vector<16x16x512xf32> to vector<1x16x512xf32>
    %151 = vector.shape_cast %150 : vector<1x16x512xf32> to vector<16x512xf32>
    %152 = arith.truncf %145 : vector<16x128xf32> to vector<16x128xbf16>
    %cst_38 = arith.constant dense<0.000000e+00> : vector<16x512xf32>
    %153 = tpu.matmul %152, %3, %cst_38 {dimension_numbers = #tpu.dot_dimension_numbers<[1], [0], [0], [1], [0, 0, 1, 1], [], []>} : vector<16x128xbf16>, vector<128x512xbf16>, vector<16x512xf32> -> vector<16x512xf32>
    %154 = arith.addf %151, %153 : vector<16x512xf32>
    %155 = vector.extract_strided_slice %154 {offsets = [0, 0], sizes = [16, 128], strides = [1, 1]} : vector<16x512xf32> to vector<16x128xf32>
    %156 = arith.negf %155 : vector<16x128xf32>
    %157 = math.exp %156 : vector<16x128xf32>
    %cst_39 = arith.constant 1.000000e+00 : f32
    %158 = vector.broadcast %cst_39 : f32 to vector<16x128xf32>
    %159 = arith.addf %158, %157 : vector<16x128xf32>
    %160 = arith.divf %158, %159 : vector<16x128xf32>
    %161 = vector.extract_strided_slice %154 {offsets = [0, 128], sizes = [16, 128], strides = [1, 1]} : vector<16x512xf32> to vector<16x128xf32>
    %162 = arith.negf %161 : vector<16x128xf32>
    %163 = math.exp %162 : vector<16x128xf32>
    %cst_40 = arith.constant 1.000000e+00 : f32
    %164 = vector.broadcast %cst_40 : f32 to vector<16x128xf32>
    %165 = arith.addf %164, %163 : vector<16x128xf32>
    %166 = arith.divf %164, %165 : vector<16x128xf32>
    %167 = vector.extract_strided_slice %154 {offsets = [0, 256], sizes = [16, 128], strides = [1, 1]} : vector<16x512xf32> to vector<16x128xf32>
    %168 = math.tanh %167 : vector<16x128xf32>
    %169 = vector.extract_strided_slice %154 {offsets = [0, 384], sizes = [16, 128], strides = [1, 1]} : vector<16x512xf32> to vector<16x128xf32>
    %170 = arith.negf %169 : vector<16x128xf32>
    %171 = math.exp %170 : vector<16x128xf32>
    %cst_41 = arith.constant 1.000000e+00 : f32
    %172 = vector.broadcast %cst_41 : f32 to vector<16x128xf32>
    %173 = arith.addf %172, %171 : vector<16x128xf32>
    %174 = arith.divf %172, %173 : vector<16x128xf32>
    %175 = arith.mulf %166, %143 : vector<16x128xf32>
    %176 = arith.mulf %160, %168 : vector<16x128xf32>
    %177 = arith.addf %175, %176 : vector<16x128xf32>
    %178 = math.tanh %177 : vector<16x128xf32>
    %179 = arith.mulf %174, %178 : vector<16x128xf32>
    %180 = arith.truncf %179 : vector<16x128xf32> to vector<16x128xbf16>
    %c4 = arith.constant 4 : index
    %c0_42 = arith.constant 0 : index
    %c0_43 = arith.constant 0 : index
    %181 = vector.load %arg5[%c4, %c0_42, %c0_43] : memref<16x16x128xbf16, #tpu.memory_space<vmem>>, vector<1x16x128xbf16>
    %182 = vector.shape_cast %181 : vector<1x16x128xbf16> to vector<16x128xbf16>
    %183 = vector.shape_cast %180 : vector<16x128xbf16> to vector<1x16x128xbf16>
    tpu.vector_store %arg5[%c4, %c0_42, %c0_43], %183 {strides = array<i32>} : memref<16x16x128xbf16, #tpu.memory_space<vmem>>, vector<1x16x128xbf16>,
    %184 = vector.extract_strided_slice %11 {offsets = [5, 0, 0], sizes = [1, 16, 512], strides = [1, 1, 1]} : vector<16x16x512xf32> to vector<1x16x512xf32>
    %185 = vector.shape_cast %184 : vector<1x16x512xf32> to vector<16x512xf32>
    %186 = arith.truncf %179 : vector<16x128xf32> to vector<16x128xbf16>
    %cst_44 = arith.constant dense<0.000000e+00> : vector<16x512xf32>
    %187 = tpu.matmul %186, %3, %cst_44 {dimension_numbers = #tpu.dot_dimension_numbers<[1], [0], [0], [1], [0, 0, 1, 1], [], []>} : vector<16x128xbf16>, vector<128x512xbf16>, vector<16x512xf32> -> vector<16x512xf32>
    %188 = arith.addf %185, %187 : vector<16x512xf32>
    %189 = vector.extract_strided_slice %188 {offsets = [0, 0], sizes = [16, 128], strides = [1, 1]} : vector<16x512xf32> to vector<16x128xf32>
    %190 = arith.negf %189 : vector<16x128xf32>
    %191 = math.exp %190 : vector<16x128xf32>
    %cst_45 = arith.constant 1.000000e+00 : f32
    %192 = vector.broadcast %cst_45 : f32 to vector<16x128xf32>
    %193 = arith.addf %192, %191 : vector<16x128xf32>
    %194 = arith.divf %192, %193 : vector<16x128xf32>
    %195 = vector.extract_strided_slice %188 {offsets = [0, 128], sizes = [16, 128], strides = [1, 1]} : vector<16x512xf32> to vector<16x128xf32>
    %196 = arith.negf %195 : vector<16x128xf32>
    %197 = math.exp %196 : vector<16x128xf32>
    %cst_46 = arith.constant 1.000000e+00 : f32
    %198 = vector.broadcast %cst_46 : f32 to vector<16x128xf32>
    %199 = arith.addf %198, %197 : vector<16x128xf32>
    %200 = arith.divf %198, %199 : vector<16x128xf32>
    %201 = vector.extract_strided_slice %188 {offsets = [0, 256], sizes = [16, 128], strides = [1, 1]} : vector<16x512xf32> to vector<16x128xf32>
    %202 = math.tanh %201 : vector<16x128xf32>
    %203 = vector.extract_strided_slice %188 {offsets = [0, 384], sizes = [16, 128], strides = [1, 1]} : vector<16x512xf32> to vector<16x128xf32>
    %204 = arith.negf %203 : vector<16x128xf32>
    %205 = math.exp %204 : vector<16x128xf32>
    %cst_47 = arith.constant 1.000000e+00 : f32
    %206 = vector.broadcast %cst_47 : f32 to vector<16x128xf32>
    %207 = arith.addf %206, %205 : vector<16x128xf32>
    %208 = arith.divf %206, %207 : vector<16x128xf32>
    %209 = arith.mulf %200, %177 : vector<16x128xf32>
    %210 = arith.mulf %194, %202 : vector<16x128xf32>
    %211 = arith.addf %209, %210 : vector<16x128xf32>
    %212 = math.tanh %211 : vector<16x128xf32>
    %213 = arith.mulf %208, %212 : vector<16x128xf32>
    %214 = arith.truncf %213 : vector<16x128xf32> to vector<16x128xbf16>
    %c5 = arith.constant 5 : index
    %c0_48 = arith.constant 0 : index
    %c0_49 = arith.constant 0 : index
    %215 = vector.load %arg5[%c5, %c0_48, %c0_49] : memref<16x16x128xbf16, #tpu.memory_space<vmem>>, vector<1x16x128xbf16>
    %216 = vector.shape_cast %215 : vector<1x16x128xbf16> to vector<16x128xbf16>
    %217 = vector.shape_cast %214 : vector<16x128xbf16> to vector<1x16x128xbf16>
    tpu.vector_store %arg5[%c5, %c0_48, %c0_49], %217 {strides = array<i32>} : memref<16x16x128xbf16, #tpu.memory_space<vmem>>, vector<1x16x128xbf16>,
    %218 = vector.extract_strided_slice %11 {offsets = [6, 0, 0], sizes = [1, 16, 512], strides = [1, 1, 1]} : vector<16x16x512xf32> to vector<1x16x512xf32>
    %219 = vector.shape_cast %218 : vector<1x16x512xf32> to vector<16x512xf32>
    %220 = arith.truncf %213 : vector<16x128xf32> to vector<16x128xbf16>
    %cst_50 = arith.constant dense<0.000000e+00> : vector<16x512xf32>
    %221 = tpu.matmul %220, %3, %cst_50 {dimension_numbers = #tpu.dot_dimension_numbers<[1], [0], [0], [1], [0, 0, 1, 1], [], []>} : vector<16x128xbf16>, vector<128x512xbf16>, vector<16x512xf32> -> vector<16x512xf32>
    %222 = arith.addf %219, %221 : vector<16x512xf32>
    %223 = vector.extract_strided_slice %222 {offsets = [0, 0], sizes = [16, 128], strides = [1, 1]} : vector<16x512xf32> to vector<16x128xf32>
    %224 = arith.negf %223 : vector<16x128xf32>
    %225 = math.exp %224 : vector<16x128xf32>
    %cst_51 = arith.constant 1.000000e+00 : f32
    %226 = vector.broadcast %cst_51 : f32 to vector<16x128xf32>
    %227 = arith.addf %226, %225 : vector<16x128xf32>
    %228 = arith.divf %226, %227 : vector<16x128xf32>
    %229 = vector.extract_strided_slice %222 {offsets = [0, 128], sizes = [16, 128], strides = [1, 1]} : vector<16x512xf32> to vector<16x128xf32>
    %230 = arith.negf %229 : vector<16x128xf32>
    %231 = math.exp %230 : vector<16x128xf32>
    %cst_52 = arith.constant 1.000000e+00 : f32
    %232 = vector.broadcast %cst_52 : f32 to vector<16x128xf32>
    %233 = arith.addf %232, %231 : vector<16x128xf32>
    %234 = arith.divf %232, %233 : vector<16x128xf32>
    %235 = vector.extract_strided_slice %222 {offsets = [0, 256], sizes = [16, 128], strides = [1, 1]} : vector<16x512xf32> to vector<16x128xf32>
    %236 = math.tanh %235 : vector<16x128xf32>
    %237 = vector.extract_strided_slice %222 {offsets = [0, 384], sizes = [16, 128], strides = [1, 1]} : vector<16x512xf32> to vector<16x128xf32>
    %238 = arith.negf %237 : vector<16x128xf32>
    %239 = math.exp %238 : vector<16x128xf32>
    %cst_53 = arith.constant 1.000000e+00 : f32
    %240 = vector.broadcast %cst_53 : f32 to vector<16x128xf32>
    %241 = arith.addf %240, %239 : vector<16x128xf32>
    %242 = arith.divf %240, %241 : vector<16x128xf32>
    %243 = arith.mulf %234, %211 : vector<16x128xf32>
    %244 = arith.mulf %228, %236 : vector<16x128xf32>
    %245 = arith.addf %243, %244 : vector<16x128xf32>
    %246 = math.tanh %245 : vector<16x128xf32>
    %247 = arith.mulf %242, %246 : vector<16x128xf32>
    %248 = arith.truncf %247 : vector<16x128xf32> to vector<16x128xbf16>
    %c6 = arith.constant 6 : index
    %c0_54 = arith.constant 0 : index
    %c0_55 = arith.constant 0 : index
    %249 = vector.load %arg5[%c6, %c0_54, %c0_55] : memref<16x16x128xbf16, #tpu.memory_space<vmem>>, vector<1x16x128xbf16>
    %250 = vector.shape_cast %249 : vector<1x16x128xbf16> to vector<16x128xbf16>
    %251 = vector.shape_cast %248 : vector<16x128xbf16> to vector<1x16x128xbf16>
    tpu.vector_store %arg5[%c6, %c0_54, %c0_55], %251 {strides = array<i32>} : memref<16x16x128xbf16, #tpu.memory_space<vmem>>, vector<1x16x128xbf16>,
    %252 = vector.extract_strided_slice %11 {offsets = [7, 0, 0], sizes = [1, 16, 512], strides = [1, 1, 1]} : vector<16x16x512xf32> to vector<1x16x512xf32>
    %253 = vector.shape_cast %252 : vector<1x16x512xf32> to vector<16x512xf32>
    %254 = arith.truncf %247 : vector<16x128xf32> to vector<16x128xbf16>
    %cst_56 = arith.constant dense<0.000000e+00> : vector<16x512xf32>
    %255 = tpu.matmul %254, %3, %cst_56 {dimension_numbers = #tpu.dot_dimension_numbers<[1], [0], [0], [1], [0, 0, 1, 1], [], []>} : vector<16x128xbf16>, vector<128x512xbf16>, vector<16x512xf32> -> vector<16x512xf32>
    %256 = arith.addf %253, %255 : vector<16x512xf32>
    %257 = vector.extract_strided_slice %256 {offsets = [0, 0], sizes = [16, 128], strides = [1, 1]} : vector<16x512xf32> to vector<16x128xf32>
    %258 = arith.negf %257 : vector<16x128xf32>
    %259 = math.exp %258 : vector<16x128xf32>
    %cst_57 = arith.constant 1.000000e+00 : f32
    %260 = vector.broadcast %cst_57 : f32 to vector<16x128xf32>
    %261 = arith.addf %260, %259 : vector<16x128xf32>
    %262 = arith.divf %260, %261 : vector<16x128xf32>
    %263 = vector.extract_strided_slice %256 {offsets = [0, 128], sizes = [16, 128], strides = [1, 1]} : vector<16x512xf32> to vector<16x128xf32>
    %264 = arith.negf %263 : vector<16x128xf32>
    %265 = math.exp %264 : vector<16x128xf32>
    %cst_58 = arith.constant 1.000000e+00 : f32
    %266 = vector.broadcast %cst_58 : f32 to vector<16x128xf32>
    %267 = arith.addf %266, %265 : vector<16x128xf32>
    %268 = arith.divf %266, %267 : vector<16x128xf32>
    %269 = vector.extract_strided_slice %256 {offsets = [0, 256], sizes = [16, 128], strides = [1, 1]} : vector<16x512xf32> to vector<16x128xf32>
    %270 = math.tanh %269 : vector<16x128xf32>
    %271 = vector.extract_strided_slice %256 {offsets = [0, 384], sizes = [16, 128], strides = [1, 1]} : vector<16x512xf32> to vector<16x128xf32>
    %272 = arith.negf %271 : vector<16x128xf32>
    %273 = math.exp %272 : vector<16x128xf32>
    %cst_59 = arith.constant 1.000000e+00 : f32
    %274 = vector.broadcast %cst_59 : f32 to vector<16x128xf32>
    %275 = arith.addf %274, %273 : vector<16x128xf32>
    %276 = arith.divf %274, %275 : vector<16x128xf32>
    %277 = arith.mulf %268, %245 : vector<16x128xf32>
    %278 = arith.mulf %262, %270 : vector<16x128xf32>
    %279 = arith.addf %277, %278 : vector<16x128xf32>
    %280 = math.tanh %279 : vector<16x128xf32>
    %281 = arith.mulf %276, %280 : vector<16x128xf32>
    %282 = arith.truncf %281 : vector<16x128xf32> to vector<16x128xbf16>
    %c7 = arith.constant 7 : index
    %c0_60 = arith.constant 0 : index
    %c0_61 = arith.constant 0 : index
    %283 = vector.load %arg5[%c7, %c0_60, %c0_61] : memref<16x16x128xbf16, #tpu.memory_space<vmem>>, vector<1x16x128xbf16>
    %284 = vector.shape_cast %283 : vector<1x16x128xbf16> to vector<16x128xbf16>
    %285 = vector.shape_cast %282 : vector<16x128xbf16> to vector<1x16x128xbf16>
    tpu.vector_store %arg5[%c7, %c0_60, %c0_61], %285 {strides = array<i32>} : memref<16x16x128xbf16, #tpu.memory_space<vmem>>, vector<1x16x128xbf16>,
    %286 = vector.extract_strided_slice %11 {offsets = [8, 0, 0], sizes = [1, 16, 512], strides = [1, 1, 1]} : vector<16x16x512xf32> to vector<1x16x512xf32>
    %287 = vector.shape_cast %286 : vector<1x16x512xf32> to vector<16x512xf32>
    %288 = arith.truncf %281 : vector<16x128xf32> to vector<16x128xbf16>
    %cst_62 = arith.constant dense<0.000000e+00> : vector<16x512xf32>
    %289 = tpu.matmul %288, %3, %cst_62 {dimension_numbers = #tpu.dot_dimension_numbers<[1], [0], [0], [1], [0, 0, 1, 1], [], []>} : vector<16x128xbf16>, vector<128x512xbf16>, vector<16x512xf32> -> vector<16x512xf32>
    %290 = arith.addf %287, %289 : vector<16x512xf32>
    %291 = vector.extract_strided_slice %290 {offsets = [0, 0], sizes = [16, 128], strides = [1, 1]} : vector<16x512xf32> to vector<16x128xf32>
    %292 = arith.negf %291 : vector<16x128xf32>
    %293 = math.exp %292 : vector<16x128xf32>
    %cst_63 = arith.constant 1.000000e+00 : f32
    %294 = vector.broadcast %cst_63 : f32 to vector<16x128xf32>
    %295 = arith.addf %294, %293 : vector<16x128xf32>
    %296 = arith.divf %294, %295 : vector<16x128xf32>
    %297 = vector.extract_strided_slice %290 {offsets = [0, 128], sizes = [16, 128], strides = [1, 1]} : vector<16x512xf32> to vector<16x128xf32>
    %298 = arith.negf %297 : vector<16x128xf32>
    %299 = math.exp %298 : vector<16x128xf32>
    %cst_64 = arith.constant 1.000000e+00 : f32
    %300 = vector.broadcast %cst_64 : f32 to vector<16x128xf32>
    %301 = arith.addf %300, %299 : vector<16x128xf32>
    %302 = arith.divf %300, %301 : vector<16x128xf32>
    %303 = vector.extract_strided_slice %290 {offsets = [0, 256], sizes = [16, 128], strides = [1, 1]} : vector<16x512xf32> to vector<16x128xf32>
    %304 = math.tanh %303 : vector<16x128xf32>
    %305 = vector.extract_strided_slice %290 {offsets = [0, 384], sizes = [16, 128], strides = [1, 1]} : vector<16x512xf32> to vector<16x128xf32>
    %306 = arith.negf %305 : vector<16x128xf32>
    %307 = math.exp %306 : vector<16x128xf32>
    %cst_65 = arith.constant 1.000000e+00 : f32
    %308 = vector.broadcast %cst_65 : f32 to vector<16x128xf32>
    %309 = arith.addf %308, %307 : vector<16x128xf32>
    %310 = arith.divf %308, %309 : vector<16x128xf32>
    %311 = arith.mulf %302, %279 : vector<16x128xf32>
    %312 = arith.mulf %296, %304 : vector<16x128xf32>
    %313 = arith.addf %311, %312 : vector<16x128xf32>
    %314 = math.tanh %313 : vector<16x128xf32>
    %315 = arith.mulf %310, %314 : vector<16x128xf32>
    %316 = arith.truncf %315 : vector<16x128xf32> to vector<16x128xbf16>
    %c8 = arith.constant 8 : index
    %c0_66 = arith.constant 0 : index
    %c0_67 = arith.constant 0 : index
    %317 = vector.load %arg5[%c8, %c0_66, %c0_67] : memref<16x16x128xbf16, #tpu.memory_space<vmem>>, vector<1x16x128xbf16>
    %318 = vector.shape_cast %317 : vector<1x16x128xbf16> to vector<16x128xbf16>
    %319 = vector.shape_cast %316 : vector<16x128xbf16> to vector<1x16x128xbf16>
    tpu.vector_store %arg5[%c8, %c0_66, %c0_67], %319 {strides = array<i32>} : memref<16x16x128xbf16, #tpu.memory_space<vmem>>, vector<1x16x128xbf16>,
    %c0_68 = arith.constant 0 : index
    %c0_69 = arith.constant 0 : index
    %320 = vector.load %arg6[%c0_68, %c0_69] : memref<16x128xf32, #tpu.memory_space<vmem>>, vector<16x128xf32>
    tpu.vector_store %arg6[%c0_68, %c0_69], %315 {strides = array<i32>} : memref<16x128xf32, #tpu.memory_space<vmem>>, vector<16x128xf32>,
    %c0_70 = arith.constant 0 : index
    %c0_71 = arith.constant 0 : index
    %321 = vector.load %arg7[%c0_70, %c0_71] : memref<16x128xf32, #tpu.memory_space<vmem>>, vector<16x128xf32>
    tpu.vector_store %arg7[%c0_70, %c0_71], %313 {strides = array<i32>} : memref<16x128xf32, #tpu.memory_space<vmem>>, vector<16x128xf32>,
    return
  }
  func.func @transform_0(%arg0: i32) -> (i32, i32, i32) {
    %c0_i32 = arith.constant 0 : i32
    %c0_i32_0 = arith.constant 0 : i32
    %c0_i32_1 = arith.constant 0 : i32
    return %arg0, %c0_i32, %c0_i32_0 : i32, i32, i32
  }
  func.func @transform_1(%arg0: i32) -> (i32, i32) {
    %c0_i32 = arith.constant 0 : i32
    %c0_i32_0 = arith.constant 0 : i32
    %c0_i32_1 = arith.constant 0 : i32
    return %c0_i32, %c0_i32_0 : i32, i32
  }
  func.func @transform_2(%arg0: i32) -> (i32, i32) {
    %c0_i32 = arith.constant 0 : i32
    %c0_i32_0 = arith.constant 0 : i32
    %c0_i32_1 = arith.constant 0 : i32
    return %c0_i32, %c0_i32_0 : i32, i32
  }
  func.func @transform_3(%arg0: i32) -> (i32, i32) {
    %c0_i32 = arith.constant 0 : i32
    %c0_i32_0 = arith.constant 0 : i32
    %c0_i32_1 = arith.constant 0 : i32
    return %c0_i32, %c0_i32_0 : i32, i32
  }
  func.func @transform_4(%arg0: i32) -> (i32, i32, i32) {
    %c0_i32 = arith.constant 0 : i32
    %c0_i32_0 = arith.constant 0 : i32
    %c0_i32_1 = arith.constant 0 : i32
    return %arg0, %c0_i32, %c0_i32_0 : i32, i32, i32
  }
}

module attributes {stable_mosaic.version = 11 : i64} {
  func.func @_proj_kernel(%arg0: i32, %arg1: memref<2x16x128xbf16, #tpu.memory_space<vmem>>, %arg2: memref<128x128xbf16, #tpu.memory_space<vmem>>, %arg3: memref<1x128xf32, #tpu.memory_space<vmem>>, %arg4: memref<2x16x128xf32, #tpu.memory_space<vmem>>) attributes {dimension_semantics = [#tpu.dimension_semantics<parallel>], iteration_bounds = array<i64: 1>, scalar_prefetch = 0 : i64, scratch_operands = 0 : i64, tpu.core_type = #tpu.core_type<tc>, window_params = [{pipeline_mode = #tpu.pipeline_mode<synchronous>, transform_indices = @transform_0, window_bounds = array<i64: 2, 16, 128>}, {transform_indices = @transform_1, window_bounds = array<i64: 128, 128>}, {transform_indices = @transform_2, window_bounds = array<i64: 1, 128>}, {transform_indices = @transform_3, window_bounds = array<i64: 2, 16, 128>}]} {
    %c0 = arith.constant 0 : index
    %c0_0 = arith.constant 0 : index
    %c0_1 = arith.constant 0 : index
    %0 = vector.load %arg1[%c0, %c0_0, %c0_1] : memref<2x16x128xbf16, #tpu.memory_space<vmem>>, vector<2x16x128xbf16>
    %1 = vector.shape_cast %0 : vector<2x16x128xbf16> to vector<32x128xbf16>
    %c0_2 = arith.constant 0 : index
    %c0_3 = arith.constant 0 : index
    %2 = vector.load %arg2[%c0_2, %c0_3] : memref<128x128xbf16, #tpu.memory_space<vmem>>, vector<128x128xbf16>
    %cst = arith.constant dense<0.000000e+00> : vector<32x128xf32>
    %3 = tpu.matmul %1, %2, %cst {dimension_numbers = #tpu.dot_dimension_numbers<[1], [0], [0], [1], [0, 0, 1, 1], [], []>} : vector<32x128xbf16>, vector<128x128xbf16>, vector<32x128xf32> -> vector<32x128xf32>
    %c0_4 = arith.constant 0 : index
    %c0_5 = arith.constant 0 : index
    %4 = vector.load %arg3[%c0_4, %c0_5] : memref<1x128xf32, #tpu.memory_space<vmem>>, vector<1x128xf32>
    %5 = vector.broadcast %4 : vector<1x128xf32> to vector<32x128xf32>
    %6 = arith.addf %3, %5 : vector<32x128xf32>
    %7 = vector.shape_cast %6 : vector<32x128xf32> to vector<2x16x128xf32>
    %c0_6 = arith.constant 0 : index
    %c0_7 = arith.constant 0 : index
    %c0_8 = arith.constant 0 : index
    %8 = vector.load %arg4[%c0_6, %c0_7, %c0_8] : memref<2x16x128xf32, #tpu.memory_space<vmem>>, vector<2x16x128xf32>
    tpu.vector_store %arg4[%c0_6, %c0_7, %c0_8], %7 {strides = array<i32>} : memref<2x16x128xf32, #tpu.memory_space<vmem>>, vector<2x16x128xf32>,
    return
  }
  func.func @transform_0(%arg0: i32) -> (i32, i32, i32) {
    %c0_i32 = arith.constant 0 : i32
    %c0_i32_0 = arith.constant 0 : i32
    %c0_i32_1 = arith.constant 0 : i32
    %c0_i32_2 = arith.constant 0 : i32
    return %c0_i32, %c0_i32_0, %c0_i32_1 : i32, i32, i32
  }
  func.func @transform_1(%arg0: i32) -> (i32, i32) {
    %c0_i32 = arith.constant 0 : i32
    %c0_i32_0 = arith.constant 0 : i32
    return %c0_i32, %arg0 : i32, i32
  }
  func.func @transform_2(%arg0: i32) -> (i32, i32) {
    %c0_i32 = arith.constant 0 : i32
    %c0_i32_0 = arith.constant 0 : i32
    return %c0_i32, %arg0 : i32, i32
  }
  func.func @transform_3(%arg0: i32) -> (i32, i32, i32) {
    %c0_i32 = arith.constant 0 : i32
    %c0_i32_0 = arith.constant 0 : i32
    %c0_i32_1 = arith.constant 0 : i32
    return %c0_i32, %c0_i32_0, %arg0 : i32, i32, i32
  }
}

</mosaic_0001>

<bundles_post_ra>
// kernel: decoder_rnn_forward.3
= control target key start
LH: loop header
LB: loop body
LE: loop exit
PB: predicated region body
PF: predicated region fallthrough
CT: control target
= control target key end

     0   :  { %s275_s1 = inlined_call_operand.vmem [shape: bf16[128,128], index: 1, kind: input, shape index: {}]   ;;  %s276_s0 = inlined_call_operand.vmem [shape: bf16[2,16,128], index: 0, kind: input, shape index: {}]   ;;  %s277_s2 = inlined_call_operand.vmem [shape: f32[1,128], index: 2, kind: input, shape index: {}]   ;;  %s278_s3 = inlined_call_operand.vmem [shape: f32[2,16,128], index: 3, kind: output, shape index: {}]  }
   0x1   :  { %v200_v0 = vld [vmem:[%s275_s1 + $0x38] sm:$0xff]   ;;  %v201_v1 = vld [vmem:[%s275_s1 + $0x30] sm:$0xff]   ;;  %v202_v2 = vld [vmem:[%s275_s1 + $0x28] sm:$0xff]  }
   0x2   :  { %180 = vmatprep.subr.bf16.mxu0 %v200_v0  ;;  %v203_v3 = vld [vmem:[%s275_s1 + $0x20] sm:$0xff]   ;;  %v204_v5 = vld [vmem:[%s275_s1 + $0x18] sm:$0xff]   ;;  %v205_v6 = vld [vmem:[%s275_s1 + $0x10] sm:$0xff]  }
   0x3   :  { %181 = vmatpush3.bf16.msra.mxu0 %v200_v0  ;;  %v208_v4 = vld [vmem:[%s276_s0] sm:$0xff]   ;;  %v206_v7 = vld [vmem:[%s275_s1 + $0x8] sm:$0xff]  }
   0x4   :  { %182 = vmatprep.subr.bf16.mxu0 %v201_v1  ;;  %196 = vmatprep.mubr.bf16.mxu0 %v208_v4  ;;  %v207_v8 = vld [vmem:[%s275_s1] sm:$0xff]   ;;  %v209_v9 = vld [vmem:[%s276_s0 + $0x8] sm:$0xff]  }
   0x5   :  { %v159_v10 = vld [vmem:[%s277_s2] ss:$0 sm:$0xff] }
   0x7   :  { %183 = vmatpush3.bf16.msra.mxu0 %v201_v1 }
   0x8   :  { %184 = vmatprep.subr.bf16.mxu0 %v202_v2 }
   0xb   :  { %185 = vmatpush3.bf16.msra.mxu0 %v202_v2 }
   0xc   :  { %186 = vmatprep.subr.bf16.mxu0 %v203_v3 }
   0xf   :  { %187 = vmatpush3.bf16.msra.mxu0 %v203_v3 }
  0x10   :  { %188 = vmatprep.subr.bf16.mxu0 %v204_v5 }
  0x13   :  { %189 = vmatpush3.bf16.msra.mxu0 %v204_v5 }
  0x14   :  { %190 = vmatprep.subr.bf16.mxu0 %v205_v6 }
  0x17   :  { %191 = vmatpush3.bf16.msra.mxu0 %v205_v6 }
  0x18   :  { %192 = vmatprep.subr.bf16.mxu0 %v206_v7 }
  0x1b   :  { %193 = vmatpush3.bf16.msra.mxu0 %v206_v7 }
  0x1c   :  { %194 = vmatprep.subr.bf16.mxu0 %v207_v8 }
  0x1f   :  { %195 = vmatpush3.bf16.msra.mxu0 %v207_v8 }
  0x22   :  { %197 = vmatmul.mubr.bf16.vlgmr.msra.gmra.mxu0 %v209_v9 }
  0xe2   :  { %v198_v11 = vpop.f32.mrf.mxu0 }
  0xe3   :  { %v145_v12 = vadd.f32 %v198_v11, %v159_v10 }
  0xe4   :  { %v136_v13 = vpop.f32.mrf.mxu0 }
  0xe5   :  { %153 = vst [vmem:[%s278_s3 + $0x10] sm:$0xff] %v145_v12  ;;  %v137_v14 = vadd.f32 %v159_v10, %v136_v13 }
  0xe6   :  { %v199_v15 = vpop.f32.mrf.mxu0 }
  0xe7   :  { %151 = vst [vmem:[%s278_s3] sm:$0xff] %v137_v14  ;;  %v148_v16 = vadd.f32 %v199_v15, %v159_v10 }
  0xe8   :  { %v139_v17 = vpop.f32.mrf.mxu0 }
  0xe9   :  { %154 = vst [vmem:[%s278_s3 + $0x18] sm:$0xff] %v148_v16  ;;  %v140_v18 = vadd.f32 %v159_v10, %v139_v17 }
  0xeb   :  { %152 = vst [vmem:[%s278_s3 + $0x8] sm:$0xff] %v140_v18 }

// kernel: decoder_rnn_forward.2
= control target key start
LH: loop header
LB: loop body
LE: loop exit
PB: predicated region body
PF: predicated region fallthrough
CT: control target
= control target key end

     0   :  { %v4045_v1 = vmov 0   ;;  %vm240_vm0 = vcmask 261120   ;;  %v2830_v57 = vmov 0.0|0.0   ;;  %s4040_s1 = inlined_call_operand.vmem [shape: bf16[32,512], index: 1, kind: input, shape index: {}]   ;;  %s4041_s0 = inlined_call_operand.vmem [shape: bf16[16,16,32], index: 0, kind: input, shape index: {}]   ;;  %s4042_s2 = inlined_call_operand.vmem [shape: bf16[128,512], index: 2, kind: input, shape index: {}]   ;;  %s4043_s3 = inlined_call_operand.vmem [shape: f32[1,512], index: 3, kind: input, shape index: {}]   ;;  %s4044_s4 = inlined_call_operand.vmem [shape: bf16[16,16,128], index: 4, kind: output, shape index: {}]  }
   0x1   :  { %v2417_v0 = vld [vmem:[%s4040_s1 + $0x24] ss:$16 sps:$4 sm:$0xff]   ;;  %321 = vmatprep.mubr.bf16.mxu0 %v4045_v1  ;;  %486 = vmatprep.mubr.bf16.mxu1 %v4045_v1  ;;  %v2419_v2 = vld [vmem:[%s4040_s1 + $0x2c] ss:$16 sps:$4 sm:$0xff]   ;;  %v2421_v3 = vld [vmem:[%s4040_s1 + $0x20] ss:$16 sps:$4 sm:$0xff]  }
   0x2   :  { %301 = vmatprep.subr.bf16.mxu0 %v2417_v0  ;;  %v2422_v4 = vld [vmem:[%s4040_s1 + $0x28] ss:$16 sps:$4 sm:$0xff]   ;;  %466 = vmatprep.subr.bf16.mxu1 %v2419_v2  ;;  %v2423_v5 = vld [vmem:[%s4040_s1 + $0x4] ss:$16 sps:$4 sm:$0xff]   ;;  %v2425_v6 = vld [vmem:[%s4040_s1 + $0xc] ss:$16 sps:$4 sm:$0xff]  }
   0x3   :  { %302 = vmatpush1.bf16.msra.mxu0 %v2421_v3  ;;  %467 = vmatpush1.bf16.msra.mxu1 %v2422_v4  ;;  %v2427_v7 = vld [vmem:[%s4040_s1] ss:$16 sps:$4 sm:$0xff]   ;;  %v2428_v8 = vld [vmem:[%s4040_s1 + $0x8] ss:$16 sps:$4 sm:$0xff]   ;;  %v2888_v10 = vld [vmem:[%s4042_s2 + $0xe4] ss:$16 sps:$4 sm:$0xff]  }
   0x4   :  { %303 = vmatprep.subr.bf16.mxu0 %v2423_v5  ;;  %468 = vmatprep.subr.bf16.mxu1 %v2425_v6  ;;  %v2429_v9 = vld [vmem:[%s4041_s0] sm:$0xff]   ;;  %v2911_v14 = vld [vmem:[%s4042_s2 + $0xec] ss:$16 sps:$4 sm:$0xff]   ;;  %v2918_v15 = vld [vmem:[%s4042_s2 + $0xe8] ss:$16 sps:$4 sm:$0xff]  }
   0x5   :  { %v2893_v11 = vld [vmem:[%s4042_s2 + $0xe0] ss:$16 sps:$4 sm:$0xff]   ;;  %v2899_v12 = vld [vmem:[%s4042_s2 + $0xc4] ss:$16 sps:$4 sm:$0xff]   ;;  %v2433_v16 = vld [vmem:[%s4041_s0 + $0x8] sm:$0xff]  }
   0x6   :  { %v2904_v13 = vld [vmem:[%s4042_s2 + $0xc0] ss:$16 sps:$4 sm:$0xff]   ;;  %v2930_v17 = vld [vmem:[%s4042_s2 + $0xa4] ss:$16 sps:$4 sm:$0xff]   ;;  %v2941_v19 = vld [vmem:[%s4042_s2 + $0xcc] ss:$16 sps:$4 sm:$0xff]  }
   0x7   :  { %304 = vmatpush1.bf16.msra.mxu0 %v2427_v7  ;;  %469 = vmatpush1.bf16.msra.mxu1 %v2428_v8  ;;  %v2936_v18 = vld [vmem:[%s4042_s2 + $0xa0] ss:$16 sps:$4 sm:$0xff]   ;;  %v2947_v20 = vld [vmem:[%s4042_s2 + $0xc8] ss:$16 sps:$4 sm:$0xff]   ;;  %v2955_v21 = vld [vmem:[%s4042_s2 + $0x84] ss:$16 sps:$4 sm:$0xff]  }
   0x8   :  { %784 = vmatprep.subr.bf16.mxu0 %v2888_v10  ;;  %827 = vmatprep.subr.bf16.mxu1 %v2911_v14  ;;  %v2962_v22 = vld [vmem:[%s4042_s2 + $0x80] ss:$16 sps:$4 sm:$0xff]   ;;  %v2969_v23 = vld [vmem:[%s4042_s2 + $0xac] ss:$16 sps:$4 sm:$0xff]   ;;  %v2974_v24 = vld [vmem:[%s4042_s2 + $0xa8] ss:$16 sps:$4 sm:$0xff]  }
   0x9   :  { %v2434_v25 = vld [vmem:[%s4041_s0 + $0x10] sm:$0xff]   ;;  %v2996_v28 = vld [vmem:[%s4042_s2 + $0x8c] ss:$16 sps:$4 sm:$0xff]   ;;  %v3002_v29 = vld [vmem:[%s4042_s2 + $0x88] ss:$16 sps:$4 sm:$0xff]  }
   0xa   :  { %2192 = vmatmul.mubr.msk.bf16.vlgmr.msra.gmra.mxu0 %vm240_vm0, %v2429_v9  ;;  %2208 = vmatmul.mubr.msk.bf16.vlgmr.msra.gmra.mxu1 %vm240_vm0, %v2429_v9  ;;  %v2984_v26 = vld [vmem:[%s4042_s2 + $0x64] ss:$16 sps:$4 sm:$0xff]   ;;  %v2989_v27 = vld [vmem:[%s4042_s2 + $0x60] ss:$16 sps:$4 sm:$0xff]   ;;  %v3024_v32 = vld [vmem:[%s4042_s2 + $0x6c] ss:$16 sps:$4 sm:$0xff]  }
   0xb   :  { %785 = vmatpush1.bf16.msra.mxu0 %v2893_v11  ;;  %331 = vmatprep.mubr.bf16.mxu0 %v4045_v1  ;;  %v3013_v30 = vld [vmem:[%s4042_s2 + $0x44] ss:$16 sps:$4 sm:$0xff]   ;;  %v3018_v31 = vld [vmem:[%s4042_s2 + $0x40] ss:$16 sps:$4 sm:$0xff]   ;;  %v3029_v33 = vld [vmem:[%s4042_s2 + $0x68] ss:$16 sps:$4 sm:$0xff]  }
   0xc   :  { %496 = vmatprep.mubr.bf16.mxu1 %v4045_v1  ;;  %786 = vmatprep.subr.bf16.mxu0 %v2899_v12  ;;  %v2441_v34 = vld [vmem:[%s4041_s0 + $0x18] sm:$0xff]   ;;  %v3040_v35 = vld [vmem:[%s4042_s2 + $0x24] ss:$16 sps:$4 sm:$0xff]   ;;  %v3046_v36 = vld [vmem:[%s4042_s2 + $0x20] ss:$16 sps:$4 sm:$0xff]  }
   0xd   :  { %828 = vmatpush1.bf16.msra.mxu1 %v2918_v15  ;;  %v3053_v37 = vld [vmem:[%s4042_s2 + $0x4c] ss:$16 sps:$4 sm:$0xff]   ;;  %v3058_v38 = vld [vmem:[%s4042_s2 + $0x48] ss:$16 sps:$4 sm:$0xff]   ;;  %v2442_v39 = vld [vmem:[%s4041_s0 + $0x20] sm:$0xff]  }
   0xe   :  { %829 = vmatprep.subr.bf16.mxu1 %v2941_v19  ;;  %v3072_v40 = vld [vmem:[%s4042_s2 + $0x4] ss:$16 sps:$4 sm:$0xff]   ;;  %v3077_v41 = vld [vmem:[%s4042_s2] ss:$16 sps:$4 sm:$0xff]   ;;  %v3082_v42 = vld [vmem:[%s4042_s2 + $0x2c] ss:$16 sps:$4 sm:$0xff]  }
   0xf   :  { %787 = vmatpush1.bf16.msra.mxu0 %v2904_v13  ;;  %v3088_v43 = vld [vmem:[%s4042_s2 + $0x28] ss:$16 sps:$4 sm:$0xff]   ;;  %v3096_v44 = vld [vmem:[%s4042_s2 + $0xc] ss:$16 sps:$4 sm:$0xff]   ;;  %v2450_v47 = vld [vmem:[%s4041_s0 + $0x30] sm:$0xff]  }
  0x10   :  { %788 = vmatprep.subr.bf16.mxu0 %v2930_v17  ;;  %v3101_v45 = vld [vmem:[%s4042_s2 + $0x8] ss:$16 sps:$4 sm:$0xff]   ;;  %v2458_v49 = vld [vmem:[%s4041_s0 + $0x40] sm:$0xff]   ;;  %v2466_v51 = vld [vmem:[%s4041_s0 + $0x50] sm:$0xff]  }
  0x11   :  { %830 = vmatpush1.bf16.msra.mxu1 %v2947_v20  ;;  %v2449_v46 = vld [vmem:[%s4041_s0 + $0x28] sm:$0xff]   ;;  %v2457_v48 = vld [vmem:[%s4041_s0 + $0x38] sm:$0xff]   ;;  %v2474_v53 = vld [vmem:[%s4041_s0 + $0x60] sm:$0xff]  }
  0x12   :  { %2193 = vmatmul.mubr.msk.bf16.gmra.mxu0 %vm240_vm0, %v2433_v16  ;;  %2209 = vmatmul.mubr.msk.bf16.gmra.mxu1 %vm240_vm0, %v2433_v16  ;;  %v2465_v50 = vld [vmem:[%s4041_s0 + $0x48] sm:$0xff]   ;;  %v2473_v52 = vld [vmem:[%s4041_s0 + $0x58] sm:$0xff]   ;;  %v2482_v55 = vld [vmem:[%s4041_s0 + $0x70] sm:$0xff]  }
  0x13   :  { %341 = vmatprep.mubr.bf16.mxu0 %v4045_v1  ;;  %506 = vmatprep.mubr.bf16.mxu1 %v4045_v1  ;;  %v2481_v54 = vld [vmem:[%s4041_s0 + $0x68] sm:$0xff]   ;;  %v2489_v56 = vld [vmem:[%s4041_s0 + $0x78] sm:$0xff]  }
  0x14   :  { %789 = vmatpush1.bf16.msra.mxu0 %v2936_v18  ;;  %831 = vmatprep.subr.bf16.mxu1 %v2969_v23 }
  0x15   :  { %790 = vmatprep.subr.bf16.mxu0 %v2955_v21  ;;  %832 = vmatpush1.bf16.msra.mxu1 %v2974_v24 }
  0x16   :  { %833 = vmatprep.subr.bf16.mxu1 %v2996_v28 }
  0x18   :  { %791 = vmatpush1.bf16.msra.mxu0 %v2962_v22 }
  0x19   :  { %792 = vmatprep.subr.bf16.mxu0 %v2984_v26  ;;  %834 = vmatpush1.bf16.msra.mxu1 %v3002_v29 }
  0x1a   :  { %2194 = vmatmul.mubr.msk.bf16.gmra.mxu0 %vm240_vm0, %v2434_v25  ;;  %2210 = vmatmul.mubr.msk.bf16.gmra.mxu1 %vm240_vm0, %v2434_v25 }
  0x1b   :  { %351 = vmatprep.mubr.bf16.mxu0 %v4045_v1  ;;  %516 = vmatprep.mubr.bf16.mxu1 %v4045_v1 }
  0x1c   :  { %793 = vmatpush1.bf16.msra.mxu0 %v2989_v27  ;;  %835 = vmatprep.subr.bf16.mxu1 %v3024_v32 }
  0x1d   :  { %794 = vmatprep.subr.bf16.mxu0 %v3013_v30  ;;  %836 = vmatpush1.bf16.msra.mxu1 %v3029_v33 }
  0x1e   :  { %837 = vmatprep.subr.bf16.mxu1 %v3053_v37 }
  0x20   :  { %795 = vmatpush1.bf16.msra.mxu0 %v3018_v31 }
  0x21   :  { %796 = vmatprep.subr.bf16.mxu0 %v3040_v35  ;;  %838 = vmatpush1.bf16.msra.mxu1 %v3058_v38 }
  0x22   :  { %2195 = vmatmul.mubr.msk.bf16.gmra.mxu0 %vm240_vm0, %v2441_v34  ;;  %2211 = vmatmul.mubr.msk.bf16.gmra.mxu1 %vm240_vm0, %v2441_v34 }
  0x23   :  { %361 = vmatprep.mubr.bf16.mxu0 %v4045_v1  ;;  %526 = vmatprep.mubr.bf16.mxu1 %v4045_v1 }
  0x24   :  { %797 = vmatpush1.bf16.msra.mxu0 %v3046_v36  ;;  %839 = vmatprep.subr.bf16.mxu1 %v3082_v42 }
  0x25   :  { %798 = vmatprep.subr.bf16.mxu0 %v3072_v40  ;;  %840 = vmatpush1.bf16.msra.mxu1 %v3088_v43 }
  0x26   :  { %841 = vmatprep.subr.bf16.mxu1 %v3096_v44 }
  0x28   :  { %799 = vmatpush1.bf16.msra.mxu0 %v3077_v41 }
  0x29   :  { %936 = vmatprep.subr.bf16.mxu0 %v2888_v10  ;;  %842 = vmatpush1.bf16.msra.mxu1 %v3101_v45 }
  0x2a   :  { %2196 = vmatmul.mubr.msk.bf16.gmra.mxu0 %vm240_vm0, %v2442_v39  ;;  %2212 = vmatmul.mubr.msk.bf16.gmra.mxu1 %vm240_vm0, %v2442_v39 }
  0x2b   :  { %371 = vmatprep.mubr.bf16.mxu0 %v4045_v1  ;;  %536 = vmatprep.mubr.bf16.mxu1 %v4045_v1 }
  0x2c   :  { %979 = vmatprep.subr.bf16.mxu1 %v2911_v14 }
  0x32   :  { %2197 = vmatmul.mubr.msk.bf16.gmra.mxu0 %vm240_vm0, %v2449_v46  ;;  %2213 = vmatmul.mubr.msk.bf16.gmra.mxu1 %vm240_vm0, %v2449_v46 }
  0x33   :  { %381 = vmatprep.mubr.bf16.mxu0 %v4045_v1  ;;  %546 = vmatprep.mubr.bf16.mxu1 %v4045_v1 }
  0x3a   :  { %2198 = vmatmul.mubr.msk.bf16.gmra.mxu0 %vm240_vm0, %v2450_v47  ;;  %2214 = vmatmul.mubr.msk.bf16.gmra.mxu1 %vm240_vm0, %v2450_v47 }
  0x3b   :  { %391 = vmatprep.mubr.bf16.mxu0 %v4045_v1  ;;  %556 = vmatprep.mubr.bf16.mxu1 %v4045_v1 }
  0x42   :  { %2199 = vmatmul.mubr.msk.bf16.gmra.mxu0 %vm240_vm0, %v2457_v48  ;;  %2215 = vmatmul.mubr.msk.bf16.gmra.mxu1 %vm240_vm0, %v2457_v48 }
  0x43   :  { %401 = vmatprep.mubr.bf16.mxu0 %v4045_v1  ;;  %566 = vmatprep.mubr.bf16.mxu1 %v4045_v1 }
  0x4a   :  { %2200 = vmatmul.mubr.msk.bf16.gmra.mxu0 %vm240_vm0, %v2458_v49  ;;  %2216 = vmatmul.mubr.msk.bf16.gmra.mxu1 %vm240_vm0, %v2458_v49 }
  0x4b   :  { %411 = vmatprep.mubr.bf16.mxu0 %v4045_v1  ;;  %576 = vmatprep.mubr.bf16.mxu1 %v4045_v1 }
  0x52   :  { %2201 = vmatmul.mubr.msk.bf16.gmra.mxu0 %vm240_vm0, %v2465_v50  ;;  %2217 = vmatmul.mubr.msk.bf16.gmra.mxu1 %vm240_vm0, %v2465_v50 }
  0x53   :  { %417 = vmatprep.mubr.bf16.mxu0 %v4045_v1  ;;  %582 = vmatprep.mubr.bf16.mxu1 %v4045_v1 }
  0x5a   :  { %2202 = vmatmul.mubr.msk.bf16.gmra.mxu0 %vm240_vm0, %v2466_v51  ;;  %2218 = vmatmul.mubr.msk.bf16.gmra.mxu1 %vm240_vm0, %v2466_v51 }
  0x5b   :  { %423 = vmatprep.mubr.bf16.mxu0 %v4045_v1  ;;  %588 = vmatprep.mubr.bf16.mxu1 %v4045_v1 }
  0x62   :  { %2203 = vmatmul.mubr.msk.bf16.gmra.mxu0 %vm240_vm0, %v2473_v52  ;;  %2219 = vmatmul.mubr.msk.bf16.gmra.mxu1 %vm240_vm0, %v2473_v52 }
  0x63   :  { %429 = vmatprep.mubr.bf16.mxu0 %v4045_v1  ;;  %594 = vmatprep.mubr.bf16.mxu1 %v4045_v1 }
  0x6a   :  { %2204 = vmatmul.mubr.msk.bf16.gmra.mxu0 %vm240_vm0, %v2474_v53  ;;  %2220 = vmatmul.mubr.msk.bf16.gmra.mxu1 %vm240_vm0, %v2474_v53 }
  0x6b   :  { %435 = vmatprep.mubr.bf16.mxu0 %v4045_v1  ;;  %600 = vmatprep.mubr.bf16.mxu1 %v4045_v1 }
  0x72   :  { %2205 = vmatmul.mubr.msk.bf16.gmra.mxu0 %vm240_vm0, %v2481_v54  ;;  %2221 = vmatmul.mubr.msk.bf16.gmra.mxu1 %vm240_vm0, %v2481_v54 }
  0x73   :  { %441 = vmatprep.mubr.bf16.mxu0 %v4045_v1  ;;  %606 = vmatprep.mubr.bf16.mxu1 %v4045_v1 }
  0x7a   :  { %2206 = vmatmul.mubr.msk.bf16.gmra.mxu0 %vm240_vm0, %v2482_v55  ;;  %2222 = vmatmul.mubr.msk.bf16.gmra.mxu1 %vm240_vm0, %v2482_v55 }
  0x7b   :  { %447 = vmatprep.mubr.bf16.mxu0 %v4045_v1  ;;  %612 = vmatprep.mubr.bf16.mxu1 %v4045_v1 }
  0x82   :  { %2207 = vmatmul.mubr.msk.bf16.gmra.mxu0 %vm240_vm0, %v2489_v56  ;;  %2223 = vmatmul.mubr.msk.bf16.gmra.mxu1 %vm240_vm0, %v2489_v56 }
  0x83   :  { %816 = vmatprep.mubr.bf16.mxu0 %v4045_v1  ;;  %859 = vmatprep.mubr.bf16.mxu1 %v4045_v1 }
  0x8a   :  { %817 = vmatmul.mubr.bf16.vlgmr.msra.gmra.mxu0 %v2830_v57  ;;  %860 = vmatmul.mubr.bf16.vlgmr.msra.gmra.mxu1 %v2830_v57 }
  0x8b   :  { %937 = vmatpush1.bf16.msra.mxu0 %v2893_v11  ;;  %980 = vmatpush1.bf16.msra.mxu1 %v2918_v15 }
  0x8c   :  { %938 = vmatprep.subr.bf16.mxu0 %v2899_v12  ;;  %981 = vmatprep.subr.bf16.mxu1 %v2941_v19 }
  0x8d   :  { %968 = vmatprep.mubr.bf16.mxu0 %v4045_v1  ;;  %1011 = vmatprep.mubr.bf16.mxu1 %v4045_v1 }
  0x8f   :  { %939 = vmatpush1.bf16.msra.mxu0 %v2904_v13  ;;  %982 = vmatpush1.bf16.msra.mxu1 %v2947_v20 }
  0x90   :  { %940 = vmatprep.subr.bf16.mxu0 %v2930_v17  ;;  %983 = vmatprep.subr.bf16.mxu1 %v2969_v23 }
  0x93   :  { %941 = vmatpush1.bf16.msra.mxu0 %v2936_v18  ;;  %984 = vmatpush1.bf16.msra.mxu1 %v2974_v24 }
  0x94   :  { %942 = vmatprep.subr.bf16.mxu0 %v2955_v21  ;;  %985 = vmatprep.subr.bf16.mxu1 %v2996_v28 }
  0x97   :  { %943 = vmatpush1.bf16.msra.mxu0 %v2962_v22  ;;  %986 = vmatpush1.bf16.msra.mxu1 %v3002_v29 }
  0x98   :  { %944 = vmatprep.subr.bf16.mxu0 %v2984_v26  ;;  %987 = vmatprep.subr.bf16.mxu1 %v3024_v32 }
  0x9b   :  { %945 = vmatpush1.bf16.msra.mxu0 %v2989_v27  ;;  %988 = vmatpush1.bf16.msra.mxu1 %v3029_v33 }
  0x9c   :  { %946 = vmatprep.subr.bf16.mxu0 %v3013_v30  ;;  %989 = vmatprep.subr.bf16.mxu1 %v3053_v37 }
  0x9f   :  { %947 = vmatpush1.bf16.msra.mxu0 %v3018_v31  ;;  %990 = vmatpush1.bf16.msra.mxu1 %v3058_v38 }
  0xa0   :  { %948 = vmatprep.subr.bf16.mxu0 %v3040_v35  ;;  %991 = vmatprep.subr.bf16.mxu1 %v3082_v42 }
  0xa3   :  { %949 = vmatpush1.bf16.msra.mxu0 %v3046_v36  ;;  %992 = vmatpush1.bf16.msra.mxu1 %v3088_v43 }
  0xa4   :  { %950 = vmatprep.subr.bf16.mxu0 %v3072_v40  ;;  %993 = vmatprep.subr.bf16.mxu1 %v3096_v44 }
  0xa7   :  { %951 = vmatpush1.bf16.msra.mxu0 %v3077_v41  ;;  %994 = vmatpush1.bf16.msra.mxu1 %v3101_v45 }
  0xa8   :  { %1089 = vmatprep.subr.bf16.mxu0 %v2888_v10  ;;  %1132 = vmatprep.subr.bf16.mxu1 %v2911_v14 }
  0xca   :  { %v3222_v58 = vpop.f32.mrf.mxu0  ;;  %v3224_v59 = vpop.f32.mrf.mxu1 }
  0xcc   :  { %v3226_v60 = vpop.f32.mrf.mxu0  ;;  %v3228_v61 = vpop.f32.mrf.mxu1 }
  0xce   :  { %v3230_v62 = vpop.f32.mrf.mxu0  ;;  %v3232_v63 = vpop.f32.mrf.mxu1 }
  0xd0   :  { %v3234_v0 = vpop.f32.mrf.mxu0  ;;  %v3236_v2 = vpop.f32.mrf.mxu1 }
  0xd2   :  { %v3238_v3 = vpop.f32.mrf.mxu0  ;;  %v3240_v4 = vpop.f32.mrf.mxu1 }
  0xd3   :  { %4047 = vst [vmem:[#allocation4_spill] sm:$0xff] %v3240_v4 }
  0xd4   :  { %v3242_v5 = vpop.f32.mrf.mxu0  ;;  %v3244_v6 = vpop.f32.mrf.mxu1 }
  0xd5   :  { %4048 = vst [vmem:[#allocation5_spill] sm:$0xff] %v3244_v6 }
  0xd6   :  { %v3246_v7 = vpop.f32.mrf.mxu0  ;;  %v3248_v8 = vpop.f32.mrf.mxu1 }
  0xd7   :  { %4049 = vst [vmem:[#allocation6_spill] sm:$0xff] %v3248_v8 }
  0xd8   :  { %v3250_v9 = vpop.f32.mrf.mxu0  ;;  %v3252_v16 = vpop.f32.mrf.mxu1 }
  0xd9   :  { %4050 = vst [vmem:[#allocation7_spill] sm:$0xff] %v3250_v9  ;;  %4051 = vst [vmem:[#allocation8_spill] sm:$0xff] %v3252_v16 }
  0xda   :  { %v3254_v25 = vpop.f32.mrf.mxu0  ;;  %v3256_v34 = vpop.f32.mrf.mxu1 }
  0xdb   :  { %4052 = vst [vmem:[#allocation9_spill] sm:$0xff] %v3254_v25  ;;  %4053 = vst [vmem:[#allocation10_spill] sm:$0xff] %v3256_v34 }
  0xdc   :  { %v3258_v39 = vpop.f32.mrf.mxu0  ;;  %v3260_v46 = vpop.f32.mrf.mxu1 }
  0xdd   :  { %4054 = vst [vmem:[#allocation11_spill] sm:$0xff] %v3258_v39  ;;  %4055 = vst [vmem:[#allocation12_spill] sm:$0xff] %v3260_v46 }
  0xde   :  { %v3262_v47 = vpop.f32.mrf.mxu0  ;;  %v3264_v48 = vpop.f32.mrf.mxu1 }
  0xdf   :  { %4056 = vst [vmem:[#allocation13_spill] sm:$0xff] %v3262_v47  ;;  %4057 = vst [vmem:[#allocation14_spill] sm:$0xff] %v3264_v48 }
  0xe0   :  { %v3266_v49 = vpop.f32.mrf.mxu0  ;;  %v3268_v50 = vpop.f32.mrf.mxu1 }
  0xe1   :  { %4058 = vst [vmem:[#allocation15_spill] sm:$0xff] %v3266_v49  ;;  %4059 = vst [vmem:[#allocation16_spill] sm:$0xff] %v3268_v50 }
  0xe2   :  { %v3270_v51 = vpop.f32.mrf.mxu0  ;;  %v3272_v52 = vpop.f32.mrf.mxu1 }
  0xe3   :  { %4060 = vst [vmem:[#allocation17_spill] sm:$0xff] %v3270_v51  ;;  %4061 = vst [vmem:[#allocation18_spill] sm:$0xff] %v3272_v52 }
  0xe4   :  { %v3274_v53 = vpop.f32.mrf.mxu0  ;;  %v3276_v54 = vpop.f32.mrf.mxu1 }
  0xe5   :  { %4062 = vst [vmem:[#allocation19_spill] sm:$0xff] %v3274_v53  ;;  %4063 = vst [vmem:[#allocation20_spill] sm:$0xff] %v3276_v54 }
  0xe6   :  { %v3278_v55 = vpop.f32.mrf.mxu0  ;;  %v3280_v56 = vpop.f32.mrf.mxu1 }
  0xe7   :  { %4064 = vst [vmem:[#allocation21_spill] sm:$0xff] %v3278_v55  ;;  %4065 = vst [vmem:[#allocation22_spill] sm:$0xff] %v3280_v56 }
  0xe8   :  { %v3282_v57 = vpop.f32.mrf.mxu0  ;;  %v3284_v1 = vpop.f32.mrf.mxu1 }
  0xe9   :  { %4066 = vst [vmem:[#allocation23_spill] sm:$0xff] %v3282_v57  ;;  %4067 = vst [vmem:[#allocation24_spill] sm:$0xff] %v3284_v1 }
  0xea   :  { %v3286_v48 = vpop.f32.mrf.mxu0  ;;  %v3288_v34 = vpop.f32.mrf.mxu1 }
  0xeb   :  { %4068 = vst [vmem:[#allocation25_spill] sm:$0xff] %v3286_v48  ;;  %4069 = vst [vmem:[#allocation26_spill] sm:$0xff] %v3288_v34 }
  0xec   :  { %v3290_v50 = vpop.f32.mrf.mxu0  ;;  %v3292_v51 = vpop.f32.mrf.mxu1 }
  0xed   :  { %4070 = vst [vmem:[#allocation27_spill] sm:$0xff] %v3290_v50  ;;  %4071 = vst [vmem:[#allocation28_spill] sm:$0xff] %v3292_v51 }
  0xee   :  { %v3294_v52 = vpop.f32.mrf.mxu0  ;;  %v3296_v53 = vpop.f32.mrf.mxu1 }
  0xef   :  { %4072 = vst [vmem:[#allocation29_spill] sm:$0xff] %v3294_v52  ;;  %4073 = vst [vmem:[#allocation30_spill] sm:$0xff] %v3296_v53 }
  0xf0   :  { %v3298_v54 = vpop.f32.mrf.mxu0  ;;  %v3300_v55 = vpop.f32.mrf.mxu1 }
  0xf1   :  { %4074 = vst [vmem:[#allocation31_spill] sm:$0xff] %v3298_v54  ;;  %4075 = vst [vmem:[#allocation32_spill] sm:$0xff] %v3300_v55 }
  0xf2   :  { %v3302_v56 = vpop.f32.mrf.mxu0  ;;  %v3304_v57 = vpop.f32.mrf.mxu1 }
  0xf3   :  { %4076 = vst [vmem:[#allocation33_spill] sm:$0xff] %v3302_v56  ;;  %4077 = vst [vmem:[#allocation34_spill] sm:$0xff] %v3304_v57 }
  0xf4   :  { %v3306_v1 = vpop.f32.mrf.mxu0  ;;  %v3308_v48 = vpop.f32.mrf.mxu1 }
  0xf5   :  { %4078 = vst [vmem:[#allocation35_spill] sm:$0xff] %v3306_v1  ;;  %4079 = vst [vmem:[#allocation36_spill] sm:$0xff] %v3308_v48 }
  0xf6   :  { %v3310_v34 = vpop.f32.mrf.mxu0  ;;  %v3312_v50 = vpop.f32.mrf.mxu1 }
  0xf7   :  { %4080 = vst [vmem:[#allocation37_spill] sm:$0xff] %v3310_v34  ;;  %4081 = vst [vmem:[#allocation38_spill] sm:$0xff] %v3312_v50 }
  0xf8   :  { %v3314_v51 = vpop.f32.mrf.mxu0  ;;  %v3316_v52 = vpop.f32.mrf.mxu1 }
  0xf9   :  { %4082 = vst [vmem:[#allocation39_spill] sm:$0xff] %v3314_v51  ;;  %4083 = vst [vmem:[#allocation40_spill] sm:$0xff] %v3316_v52 }
  0xfa   :  { %v3318_v53 = vpop.f32.mrf.mxu0  ;;  %v3320_v54 = vpop.f32.mrf.mxu1 }
  0xfb   :  { %4084 = vst [vmem:[#allocation41_spill] sm:$0xff] %v3318_v53  ;;  %4085 = vst [vmem:[#allocation42_spill] sm:$0xff] %v3320_v54 }
  0xfc   :  { %v3322_v55 = vpop.f32.mrf.mxu0  ;;  %v3324_v56 = vpop.f32.mrf.mxu1 }
  0xfd   :  { %4086 = vst [vmem:[#allocation43_spill] sm:$0xff] %v3322_v55  ;;  %4087 = vst [vmem:[#allocation44_spill] sm:$0xff] %v3324_v56 }
  0xfe   :  { %v3326_v57 = vpop.f32.mrf.mxu0  ;;  %v3328_v1 = vpop.f32.mrf.mxu1 }
  0xff   :  { %4088 = vst [vmem:[#allocation45_spill] sm:$0xff] %v3326_v57  ;;  %4089 = vst [vmem:[#allocation46_spill] sm:$0xff] %v3328_v1 }
 0x100   :  { %v3330_v48 = vpop.f32.mrf.mxu0  ;;  %v3332_v34 = vpop.f32.mrf.mxu1 }
 0x101   :  { %4090 = vst [vmem:[#allocation47_spill] sm:$0xff] %v3330_v48  ;;  %4091 = vst [vmem:[#allocation48_spill] sm:$0xff] %v3332_v34 }
 0x102   :  { %v3334_v50 = vpop.f32.mrf.mxu0  ;;  %v3336_v51 = vpop.f32.mrf.mxu1 }
 0x103   :  { %4092 = vst [vmem:[#allocation49_spill] sm:$0xff] %v3334_v50  ;;  %4093 = vst [vmem:[#allocation50_spill] sm:$0xff] %v3336_v51 }
 0x104   :  { %v3338_v52 = vpop.f32.mrf.mxu0  ;;  %v3340_v53 = vpop.f32.mrf.mxu1 }
 0x105   :  { %4094 = vst [vmem:[#allocation51_spill] sm:$0xff] %v3338_v52  ;;  %4095 = vst [vmem:[#allocation52_spill] sm:$0xff] %v3340_v53 }
 0x106   :  { %v3342_v54 = vpop.f32.mrf.mxu0  ;;  %v3344_v55 = vpop.f32.mrf.mxu1 }
 0x107   :  { %4096 = vst [vmem:[#allocation53_spill] sm:$0xff] %v3342_v54  ;;  %4097 = vst [vmem:[#allocation54_spill] sm:$0xff] %v3344_v55 }
 0x108   :  { %v3346_v56 = vpop.f32.mrf.mxu0  ;;  %v3348_v57 = vpop.f32.mrf.mxu1 }
 0x109   :  { %4098 = vst [vmem:[#allocation55_spill] sm:$0xff] %v3346_v56  ;;  %4099 = vst [vmem:[#allocation56_spill] sm:$0xff] %v3348_v57 }
 0x10a   :  { %v3350_v1 = vpop.f32.mrf.mxu0  ;;  %v3352_v48 = vpop.f32.mrf.mxu1 }
 0x10b   :  { %4100 = vst [vmem:[#allocation57_spill] sm:$0xff] %v3350_v1  ;;  %4101 = vst [vmem:[#allocation58_spill] sm:$0xff] %v3352_v48 }
 0x10c   :  { %v3354_v34 = vpop.f32.mrf.mxu0  ;;  %v3356_v50 = vpop.f32.mrf.mxu1 }
 0x10d   :  { %4102 = vst [vmem:[#allocation59_spill] sm:$0xff] %v3354_v34  ;;  %4103 = vst [vmem:[#allocation60_spill] sm:$0xff] %v3356_v50 }
 0x10e   :  { %v3358_v51 = vpop.f32.mrf.mxu0  ;;  %v3360_v52 = vpop.f32.mrf.mxu1 }
 0x10f   :  { %4104 = vst [vmem:[#allocation61_spill] sm:$0xff] %v3358_v51  ;;  %4105 = vst [vmem:[#allocation62_spill] sm:$0xff] %v3360_v52 }
 0x110   :  { %v3362_v53 = vpop.f32.mrf.mxu0  ;;  %v3364_v54 = vpop.f32.mrf.mxu1 }
 0x111   :  { %4106 = vst [vmem:[#allocation63_spill] sm:$0xff] %v3362_v53  ;;  %4107 = vst [vmem:[#allocation64_spill] sm:$0xff] %v3364_v54 }
 0x112   :  { %v413_v55 = vpop.f32.mrf.mxu0  ;;  %v578_v56 = vpop.f32.mrf.mxu1 }
 0x114   :  { %v414_v46 = vpop.f32.mrf.mxu0  ;;  %v579_v57 = vpop.f32.mrf.mxu1 }
 0x116   :  { %v415_v49 = vpop.f32.mrf.mxu0  ;;  %v580_v1 = vpop.f32.mrf.mxu1 }
 0x118   :  { %v416_v47 = vpop.f32.mrf.mxu0  ;;  %v581_v48 = vpop.f32.mrf.mxu1 }
 0x11a   :  { %v419_v39 = vpop.f32.mrf.mxu0  ;;  %v584_v34 = vpop.f32.mrf.mxu1 }
 0x11c   :  { %v420_v25 = vpop.f32.mrf.mxu0  ;;  %v585_v50 = vpop.f32.mrf.mxu1 }
 0x11e   :  { %v421_v8 = vpop.f32.mrf.mxu0  ;;  %v586_v51 = vpop.f32.mrf.mxu1 }
 0x120   :  { %v422_v16 = vpop.f32.mrf.mxu0  ;;  %v587_v52 = vpop.f32.mrf.mxu1 }
 0x122   :  { %v425_v4 = vpop.f32.mrf.mxu0  ;;  %v590_v53 = vpop.f32.mrf.mxu1 }
 0x124   :  { %v426_v6 = vpop.f32.mrf.mxu0  ;;  %v591_v54 = vpop.f32.mrf.mxu1 }
 0x126   :  { %v427_v55 = vpop.f32.mrf.mxu0  ;;  %v592_v56 = vpop.f32.mrf.mxu1 }
 0x127   :  { %v100_v55 = vlaneseq }
 0x128   :  { %v428_v46 = vpop.f32.mrf.mxu0  ;;  %v593_v57 = vpop.f32.mrf.mxu1 }
 0x12a   :  { %v431_v49 = vpop.f32.mrf.mxu0  ;;  %v596_v1 = vpop.f32.mrf.mxu1 }
 0x12b   :  { %v101_v1 = vshrl.u32 %v100_v55, 7 }
 0x12c   :  { %v432_v47 = vpop.f32.mrf.mxu0  ;;  %v597_v48 = vpop.f32.mrf.mxu1 }
 0x12e   :  { %v433_v39 = vpop.f32.mrf.mxu0  ;;  %v598_v34 = vpop.f32.mrf.mxu1 }
 0x130   :  { %v434_v25 = vpop.f32.mrf.mxu0  ;;  %v599_v50 = vpop.f32.mrf.mxu1 }
 0x131   :  { %v102_v25 = vsub.s32 0, %v101_v1  ;;  %v98_v50 = vld [vmem:[%s4043_s3] sm:$0xf] }
 0x132   :  { %v437_v8 = vpop.f32.mrf.mxu0  ;;  %v602_v51 = vpop.f32.mrf.mxu1 }
 0x134   :  { %v438_v16 = vpop.f32.mrf.mxu0  ;;  %v603_v52 = vpop.f32.mrf.mxu1 }
 0x135   :  { %v106_v16 = vsub.s32 1, %v101_v1 }
 0x136   :  { %v439_v4 = vpop.f32.mrf.mxu0  ;;  %v604_v53 = vpop.f32.mrf.mxu1 }
 0x137   :  { %v3369_v53 = vrot.slane %v98_v50, %v102_v25 }
 0x138   :  { %v440_v6 = vpop.f32.mrf.mxu0  ;;  %v605_v54 = vpop.f32.mrf.mxu1 }
 0x139   :  { %v328_v25 = vadd.f32 %v3230_v62, %v3369_v53 }
 0x13a   :  { %v443_v56 = vpop.f32.mrf.mxu0  ;;  %v608_v46 = vpop.f32.mrf.mxu1 }
 0x13b   :  { %v3371_v56 = vrot.slane %v98_v50, %v106_v16  ;;  %v110_v16 = vsub.s32 2, %v101_v1 }
 0x13c   :  { %v444_v57 = vpop.f32.mrf.mxu0  ;;  %v609_v49 = vpop.f32.mrf.mxu1 }
 0x13d   :  { %v324_v57 = vadd.f32 %v3222_v58, %v3369_v53  ;;  %v3383_v9 = vrot.slane %v98_v50, %v110_v16 }
 0x13e   :  { %v445_v47 = vpop.f32.mrf.mxu0  ;;  %v610_v48 = vpop.f32.mrf.mxu1 }
 0x13f   :  { %v326_v47 = vadd.f32 %v3226_v60, %v3371_v56 }
 0x140   :  { %v446_v39 = vpop.f32.mrf.mxu0  ;;  %v611_v34 = vpop.f32.mrf.mxu1 }
 0x141   :  { %v114_v34 = vsub.s32 3, %v101_v1 }
 0x142   :  { %v449_v8 = vpop.f32.mrf.mxu0  ;;  %v614_v51 = vpop.f32.mrf.mxu1 }
 0x144   :  { %v450_v52 = vpop.f32.mrf.mxu0  ;;  %v615_v4 = vpop.f32.mrf.mxu1 }
 0x146   :  { %v451_v6 = vpop.f32.mrf.mxu0  ;;  %v616_v54 = vpop.f32.mrf.mxu1 }
 0x147   :  { %v330_v6 = vadd.f32 %v3234_v0, %v3371_v56 }
 0x148   :  { %v452_v55 = vpop.f32.mrf.mxu0  ;;  %v617_v46 = vpop.f32.mrf.mxu1 }
 0x149   :  { %v3381_v46 = vrot.slane %v98_v50, %v114_v34  ;;  %v493_v50 = vadd.f32 %v3232_v63, %v3383_v9 }
 0x14a   :  { %v818_v49 = vpop.f32.mrf.mxu0  ;;  %v861_v39 = vpop.f32.mrf.mxu1 }
 0x14b   :  { %v870_v48 = vadd.f32 %v818_v49, %v324_v57  ;;  %v491_v1 = vadd.f32 %v3228_v61, %v3381_v46  ;;  %v495_v34 = vadd.f32 %v3236_v2, %v3381_v46 }
 0x14c   :  { %v820_v8 = vpop.f32.mrf.mxu0  ;;  %v863_v54 = vpop.f32.mrf.mxu1 }
 0x14d   :  { %v2256_v51 = vmul.f32 -1.442695, %v870_v48  ;;  %v871_v52 = vadd.f32 %v820_v8, %v326_v47  ;;  %v873_v0 = vadd.f32 %v863_v54, %v491_v1  ;;  %v489_v48 = vadd.f32 %v3224_v59, %v3383_v9 }
 0x14e   :  { %v822_v4 = vpop.f32.mrf.mxu0  ;;  %v865_v62 = vpop.f32.mrf.mxu1 }
 0x14f   :  { %2493 = vpow2.f32 %v2256_v51  ;;  %v2258_v58 = vmul.f32 -1.442695, %v871_v52  ;;  %v874_v55 = vadd.f32 %v822_v4, %v328_v25  ;;  %v872_v25 = vadd.f32 %v861_v39, %v489_v48 }
 0x150   :  { %v824_v60 = vpop.f32.mrf.mxu0  ;;  %v867_v8 = vpop.f32.mrf.mxu1  ;;  %v2260_v51 = vmul.f32 -1.442695, %v873_v0  ;;  %v876_v4 = vadd.f32 %v865_v62, %v493_v50 }
 0x151   :  { %2495 = vpow2.f32 %v2258_v58  ;;  %v2257_v57 = vmul.f32 -1.442695, %v874_v55  ;;  %v875_v49 = vadd.f32 %v824_v60, %v330_v6  ;;  %v877_v52 = vadd.f32 %v867_v8, %v495_v34 }
 0x153   :  { %2497 = vpow2.f32 %v2257_v57  ;;  %v2259_v47 = vmul.f32 -1.442695, %v875_v49  ;;  %v2261_v58 = vmul.f32 -1.442695, %v877_v52 }
 0x155   :  { %2499 = vpow2.f32 %v2259_v47 }
 0x156   :  { %2501 = vtanh.f32 %v872_v25 }
 0x157   :  { %2503 = vpow2.f32 %v2260_v51 }
 0x15c   :  { %v2494_v16 = vpop.eup %2493 }
 0x15d   :  { %v884_v6 = vadd.f32 1.0, %v2494_v16 }
 0x15e   :  { %v2496_v61 = vpop.eup %2495 }
 0x15f   :  { %2505 = vrcp.f32 %v884_v6  ;;  %v896_v54 = vadd.f32 1.0, %v2496_v61 }
 0x160   :  { %v2498_v59 = vpop.eup %2497  ;;  %2507 = vtanh.f32 %v876_v4 }
 0x161   :  { %2509 = vrcp.f32 %v896_v54  ;;  %v885_v55 = vadd.f32 1.0, %v2498_v59 }
 0x162   :  { %v2500_v2 = vpop.eup %2499  ;;  %2511 = vpow2.f32 %v2261_v58 }
 0x163   :  { %2513 = vrcp.f32 %v885_v55  ;;  %v897_v39 = vadd.f32 1.0, %v2500_v2  ;;  %v2502_v63 = vpop.eup %2501  ;;  %v4108_v2 = vmov 0  }
 0x164   :  { %v2504_v60 = vpop.eup %2503 }
 0x165   :  { %2515 = vrcp.f32 %v897_v39  ;;  %v910_v8 = vadd.f32 1.0, %v2504_v60  ;;  %v4110_v39 = vld [vmem:[#allocation5_spill] sm:$0xff]  ;;  %v4111_v60 = vld [vmem:[#allocation4_spill] sm:$0xff] }
 0x167   :  { %2517 = vrcp.f32 %v910_v8 }
 0x16c   :  { %v2506_v57 = vpop.eup %2505 }
 0x16d   :  { %v2508_v49 = vpop.eup %2507  ;;  %v918_v62 = vmul.f32 %v2506_v57, %v2502_v63  ;;  %v499_v57 = vadd.f32 %v4111_v60, %v3383_v9  ;;  %v3478_v60 = vld [vmem:[%s4042_s2 + $0xc4] ss:$16 sps:$4 sm:$0xff]  }
 0x16e   :  { %v2510_v47 = vpop.eup %2509 }
 0x16f   :  { %v2512_v1 = vpop.eup %2511  ;;  %v916_v0 = vmul.f32 0.0, %v2510_v47 }
 0x170   :  { %v2514_v48 = vpop.eup %2513  ;;  %v911_v51 = vadd.f32 1.0, %v2512_v1 }
 0x171   :  { %v3393_v34 = vadd.f32 %v918_v62, %v916_v0  ;;  %v919_v25 = vmul.f32 %v2514_v48, %v2508_v49  ;;  %v4112_v62 = vld [vmem:[#allocation8_spill] sm:$0xff]  ;;  %v4113_v0 = vld [vmem:[#allocation6_spill] sm:$0xff] }
 0x172   :  { %v2516_v50 = vpop.eup %2515  ;;  %v505_v47 = vadd.f32 %v4112_v62, %v3381_v46  ;;  %v503_v48 = vadd.f32 %v4113_v0, %v3383_v9  ;;  %v3498_v62 = vld [vmem:[%s4042_s2 + $0xc8] ss:$16 sps:$4 sm:$0xff]   ;;  %v3516_v0 = vld [vmem:[%s4042_s2 + $0xa0] ss:$16 sps:$4 sm:$0xff]  }
 0x173   :  { %v917_v52 = vmul.f32 0.0, %v2516_v50  ;;  %2519 = vtanh.f32 %v3393_v34 }
 0x174   :  { %2521 = vrcp.f32 %v911_v51  ;;  %v2518_v4 = vpop.eup %2517 }
 0x175   :  { %v3396_v16 = vadd.f32 %v919_v25, %v917_v52 }
 0x177   :  { %2523 = vtanh.f32 %v3396_v16 }
 0x180   :  { %v2520_v6 = vpop.eup %2519 }
 0x181   :  { %v2522_v61 = vpop.eup %2521  ;;  %v924_v54 = vmul.f32 %v2520_v6, %v2518_v4 }
 0x184   :  { %v2524_v58 = vpop.eup %2523 }
 0x185   :  { %v925_v59 = vmul.f32 %v2524_v58, %v2522_v61 }
 0x187   :  { %v926_v55 = vpack.c.bf16 %v925_v59, %v924_v54 }
 0x189   :  { %2366 = vst [vmem:[%s4044_s4] sm:$0xff] %v926_v55   ;;  %969 = vmatmul.mubr.bf16.vlgmr.msra.gmra.mxu0 %v926_v55  ;;  %1012 = vmatmul.mubr.bf16.vlgmr.msra.gmra.mxu1 %v926_v55 }
 0x18a   :  { %1090 = vmatpush1.bf16.msra.mxu0 %v2893_v11  ;;  %1133 = vmatpush1.bf16.msra.mxu1 %v2918_v15  ;;  %v334_v11 = vadd.f32 %v3238_v3, %v3369_v53 }
 0x18b   :  { %1091 = vmatprep.subr.bf16.mxu0 %v2899_v12  ;;  %1134 = vmatprep.subr.bf16.mxu1 %v2941_v19  ;;  %v338_v19 = vadd.f32 %v3246_v7, %v3369_v53  ;;  %v501_v7 = vadd.f32 %v4110_v39, %v3381_v46 }
 0x18c   :  { %1121 = vmatprep.mubr.bf16.mxu0 %v4108_v2  ;;  %1164 = vmatprep.mubr.bf16.mxu1 %v4108_v2 }
 0x18e   :  { %1092 = vmatpush1.bf16.msra.mxu0 %v2904_v13  ;;  %1135 = vmatpush1.bf16.msra.mxu1 %v2947_v20  ;;  %v336_v13 = vadd.f32 %v3242_v5, %v3371_v56 }
 0x18f   :  { %1093 = vmatprep.subr.bf16.mxu0 %v2930_v17  ;;  %1136 = vmatprep.subr.bf16.mxu1 %v2969_v23 }
 0x192   :  { %1094 = vmatpush1.bf16.msra.mxu0 %v2936_v18  ;;  %1137 = vmatpush1.bf16.msra.mxu1 %v2974_v24 }
 0x193   :  { %1095 = vmatprep.subr.bf16.mxu0 %v2955_v21  ;;  %1138 = vmatprep.subr.bf16.mxu1 %v2996_v28 }
 0x196   :  { %1096 = vmatpush1.bf16.msra.mxu0 %v2962_v22  ;;  %1139 = vmatpush1.bf16.msra.mxu1 %v3002_v29 }
 0x197   :  { %1097 = vmatprep.subr.bf16.mxu0 %v2984_v26  ;;  %1140 = vmatprep.subr.bf16.mxu1 %v3024_v32 }
 0x19a   :  { %1098 = vmatpush1.bf16.msra.mxu0 %v2989_v27  ;;  %1141 = vmatpush1.bf16.msra.mxu1 %v3029_v33 }
 0x19b   :  { %1099 = vmatprep.subr.bf16.mxu0 %v3013_v30  ;;  %1142 = vmatprep.subr.bf16.mxu1 %v3053_v37 }
 0x19e   :  { %1100 = vmatpush1.bf16.msra.mxu0 %v3018_v31  ;;  %1143 = vmatpush1.bf16.msra.mxu1 %v3058_v38 }
 0x19f   :  { %1101 = vmatprep.subr.bf16.mxu0 %v3040_v35  ;;  %1144 = vmatprep.subr.bf16.mxu1 %v3082_v42 }
 0x1a2   :  { %1102 = vmatpush1.bf16.msra.mxu0 %v3046_v36  ;;  %1145 = vmatpush1.bf16.msra.mxu1 %v3088_v43 }
 0x1a3   :  { %1103 = vmatprep.subr.bf16.mxu0 %v3072_v40  ;;  %1146 = vmatprep.subr.bf16.mxu1 %v3096_v44 }
 0x1a6   :  { %1104 = vmatpush1.bf16.msra.mxu0 %v3077_v41  ;;  %1147 = vmatpush1.bf16.msra.mxu1 %v3101_v45 }
 0x1a7   :  { %1242 = vmatprep.subr.bf16.mxu0 %v2888_v10  ;;  %1285 = vmatprep.subr.bf16.mxu1 %v2911_v14  ;;  %v4109_v10 = vld [vmem:[#allocation7_spill] sm:$0xff] }
 0x1a8   :  { %v340_v23 = vadd.f32 %v4109_v10, %v3371_v56 }
 0x249   :  { %v970_v12 = vpop.f32.mrf.mxu0  ;;  %v1013_v17 = vpop.f32.mrf.mxu1 }
 0x24a   :  { %v1022_v15 = vadd.f32 %v970_v12, %v334_v11  ;;  %v1024_v1 = vadd.f32 %v1013_v17, %v499_v57  ;;  %v3484_v57 = vld [vmem:[%s4042_s2 + $0xcc] ss:$16 sps:$4 sm:$0xff]  }
 0x24b   :  { %v972_v18 = vpop.f32.mrf.mxu0  ;;  %v1015_v24 = vpop.f32.mrf.mxu1 }
 0x24c   :  { %v2264_v20 = vmul.f32 -1.442695, %v1022_v15  ;;  %v1023_v21 = vadd.f32 %v972_v18, %v336_v13  ;;  %v1025_v63 = vadd.f32 %v1015_v24, %v501_v7 }
 0x24d   :  { %v974_v22 = vpop.f32.mrf.mxu0  ;;  %v1017_v3 = vpop.f32.mrf.mxu1 }
 0x24e   :  { %2525 = vpow2.f32 %v2264_v20  ;;  %v2266_v14 = vmul.f32 -1.442695, %v1023_v21  ;;  %v1026_v26 = vadd.f32 %v974_v22, %v338_v19  ;;  %v2268_v8 = vmul.f32 -1.442695, %v1025_v63  ;;  %v3472_v63 = vld [vmem:[%s4042_s2 + $0xe8] ss:$16 sps:$4 sm:$0xff]  }
 0x24f   :  { %v976_v27 = vpop.f32.mrf.mxu0  ;;  %v1019_v49 = vpop.f32.mrf.mxu1  ;;  %v1028_v51 = vadd.f32 %v1017_v3, %v503_v48  ;;  %v3522_v48 = vld [vmem:[%s4042_s2 + $0xa8] ss:$16 sps:$4 sm:$0xff]  }
 0x250   :  { %2527 = vpow2.f32 %v2266_v14  ;;  %v2265_v28 = vmul.f32 -1.442695, %v1026_v26  ;;  %v1027_v29 = vadd.f32 %v976_v27, %v340_v23  ;;  %v1029_v25 = vadd.f32 %v1019_v49, %v505_v47  ;;  %v3492_v49 = vld [vmem:[%s4042_s2 + $0xc0] ss:$16 sps:$4 sm:$0xff]   ;;  %v3504_v47 = vld [vmem:[%s4042_s2 + $0xa4] ss:$16 sps:$4 sm:$0xff]  }
 0x252   :  { %2529 = vpow2.f32 %v2265_v28  ;;  %v2267_v5 = vmul.f32 -1.442695, %v1027_v29  ;;  %v2269_v6 = vmul.f32 -1.442695, %v1029_v25  ;;  %v3534_v25 = vld [vmem:[%s4042_s2 + $0x8c] ss:$16 sps:$4 sm:$0xff]  }
 0x254   :  { %2531 = vpow2.f32 %v2267_v5 }
 0x255   :  { %2533 = vtanh.f32 %v1024_v1  ;;  %v3510_v1 = vld [vmem:[%s4042_s2 + $0xac] ss:$16 sps:$4 sm:$0xff]  }
 0x256   :  { %2535 = vpow2.f32 %v2268_v8  ;;  %v3528_v8 = vld [vmem:[%s4042_s2 + $0x84] ss:$16 sps:$4 sm:$0xff]  }
 0x25b   :  { %v2526_v50 = vpop.eup %2525 }
 0x25c   :  { %v1036_v52 = vadd.f32 1.0, %v2526_v50  ;;  %v3540_v50 = vld [vmem:[%s4042_s2 + $0x80] ss:$16 sps:$4 sm:$0xff]  }
 0x25d   :  { %v2528_v4 = vpop.eup %2527 }
 0x25e   :  { %2537 = vrcp.f32 %v1036_v52  ;;  %v1048_v61 = vadd.f32 1.0, %v2528_v4  ;;  %v3552_v52 = vld [vmem:[%s4042_s2 + $0x64] ss:$16 sps:$4 sm:$0xff]   ;;  %v3559_v4 = vld [vmem:[%s4042_s2 + $0x60] ss:$16 sps:$4 sm:$0xff]  }
 0x25f   :  { %v2530_v58 = vpop.eup %2529  ;;  %2539 = vtanh.f32 %v1028_v51  ;;  %v3546_v51 = vld [vmem:[%s4042_s2 + $0x88] ss:$16 sps:$4 sm:$0xff]  }
 0x260   :  { %2541 = vrcp.f32 %v1048_v61  ;;  %v1037_v54 = vadd.f32 1.0, %v2530_v58  ;;  %v4117_v61 = vld [vmem:[#allocation15_spill] sm:$0xff] }
 0x261   :  { %v2532_v59 = vpop.eup %2531  ;;  %2543 = vpow2.f32 %v2269_v6  ;;  %v350_v58 = vadd.f32 %v4117_v61, %v3371_v56 }
 0x262   :  { %2545 = vrcp.f32 %v1037_v54  ;;  %v1049_v55 = vadd.f32 1.0, %v2532_v59  ;;  %v2534_v11 = vpop.eup %2533 }
 0x263   :  { %v2536_v12 = vpop.eup %2535 }
 0x264   :  { %2547 = vrcp.f32 %v1049_v55  ;;  %v1062_v22 = vadd.f32 1.0, %v2536_v12 }
 0x266   :  { %2549 = vrcp.f32 %v1062_v22 }
 0x26b   :  { %v2538_v13 = vpop.eup %2537 }
 0x26c   :  { %v2540_v15 = vpop.eup %2539  ;;  %v1070_v17 = vmul.f32 %v2538_v13, %v2534_v11 }
 0x26d   :  { %v2542_v18 = vpop.eup %2541 }
 0x26e   :  { %v2544_v19 = vpop.eup %2543  ;;  %v1068_v20 = vmul.f32 %v2542_v18, %v3393_v34  ;;  %v4118_v18 = vld [vmem:[#allocation12_spill] sm:$0xff] }
 0x26f   :  { %v2546_v21 = vpop.eup %2545  ;;  %v1063_v24 = vadd.f32 1.0, %v2544_v19  ;;  %v511_v19 = vadd.f32 %v4118_v18, %v3381_v46 }
 0x270   :  { %v3453_v10 = vadd.f32 %v1070_v17, %v1068_v20  ;;  %v1071_v23 = vmul.f32 %v2546_v21, %v2540_v15  ;;  %v4119_v21 = vld [vmem:[#allocation10_spill] sm:$0xff] }
 0x271   :  { %v2548_v14 = vpop.eup %2547  ;;  %v509_v22 = vadd.f32 %v4119_v21, %v3383_v9 }
 0x272   :  { %v1069_v26 = vmul.f32 %v2548_v14, %v3396_v16  ;;  %2551 = vtanh.f32 %v3453_v10  ;;  %v3466_v16 = vld [vmem:[%s4042_s2 + $0xe0] ss:$16 sps:$4 sm:$0xff]  }
 0x273   :  { %2553 = vrcp.f32 %v1063_v24  ;;  %v2550_v28 = vpop.eup %2549  ;;  %v4120_v14 = vld [vmem:[#allocation16_spill] sm:$0xff] }
 0x274   :  { %v3456_v27 = vadd.f32 %v1071_v23, %v1069_v26  ;;  %v515_v24 = vadd.f32 %v4120_v14, %v3381_v46  ;;  %v3641_v14 = vld [vmem:[%s4042_s2 + $0x68] ss:$16 sps:$4 sm:$0xff]  }
 0x276   :  { %2555 = vtanh.f32 %v3456_v27 }
 0x27f   :  { %v2552_v29 = vpop.eup %2551 }
 0x280   :  { %v2554_v34 = vpop.eup %2553  ;;  %v1076_v5 = vmul.f32 %v2552_v29, %v2550_v28  ;;  %v4121_v28 = vld [vmem:[#allocation14_spill] sm:$0xff] }
 0x281   :  { %v513_v29 = vadd.f32 %v4121_v28, %v3383_v9  ;;  %v3659_v28 = vld [vmem:[%s4042_s2 + $0x40] ss:$16 sps:$4 sm:$0xff]  }
 0x283   :  { %v2556_v3 = vpop.eup %2555 }
 0x284   :  { %v1077_v39 = vmul.f32 %v2556_v3, %v2554_v34 }
 0x286   :  { %v1078_v7 = vpack.c.bf16 %v1077_v39, %v1076_v5 }
 0x288   :  { %2407 = vst [vmem:[%s4044_s4 + $0x8] sm:$0xff] %v1078_v7   ;;  %1122 = vmatmul.mubr.bf16.vlgmr.msra.gmra.mxu0 %v1078_v7  ;;  %1165 = vmatmul.mubr.bf16.vlgmr.msra.gmra.mxu1 %v1078_v7 }
 0x289   :  { %1243 = vmatpush1.bf16.msra.mxu0 %v3466_v16  ;;  %1286 = vmatpush1.bf16.msra.mxu1 %v3472_v63 }
 0x28a   :  { %1244 = vmatprep.subr.bf16.mxu0 %v3478_v60  ;;  %1287 = vmatprep.subr.bf16.mxu1 %v3484_v57 }
 0x28b   :  { %1274 = vmatprep.mubr.bf16.mxu0 %v4108_v2  ;;  %1317 = vmatprep.mubr.bf16.mxu1 %v4108_v2 }
 0x28d   :  { %1245 = vmatpush1.bf16.msra.mxu0 %v3492_v49  ;;  %1288 = vmatpush1.bf16.msra.mxu1 %v3498_v62 }
 0x28e   :  { %1246 = vmatprep.subr.bf16.mxu0 %v3504_v47  ;;  %1289 = vmatprep.subr.bf16.mxu1 %v3510_v1 }
 0x291   :  { %1247 = vmatpush1.bf16.msra.mxu0 %v3516_v0  ;;  %1290 = vmatpush1.bf16.msra.mxu1 %v3522_v48 }
 0x292   :  { %1248 = vmatprep.subr.bf16.mxu0 %v3528_v8  ;;  %1291 = vmatprep.subr.bf16.mxu1 %v3534_v25 }
 0x295   :  { %1249 = vmatpush1.bf16.msra.mxu0 %v3540_v50  ;;  %1292 = vmatpush1.bf16.msra.mxu1 %v3546_v51 }
 0x296   :  { %1250 = vmatprep.subr.bf16.mxu0 %v3552_v52  ;;  %1293 = vmatprep.subr.bf16.mxu1 %v3024_v32  ;;  %v4114_v32 = vld [vmem:[#allocation9_spill] sm:$0xff] }
 0x299   :  { %1251 = vmatpush1.bf16.msra.mxu0 %v3559_v4  ;;  %1294 = vmatpush1.bf16.msra.mxu1 %v3029_v33  ;;  %v344_v33 = vadd.f32 %v4114_v32, %v3369_v53 }
 0x29a   :  { %1252 = vmatprep.subr.bf16.mxu0 %v3013_v30  ;;  %1295 = vmatprep.subr.bf16.mxu1 %v3053_v37  ;;  %v3578_v30 = vld [vmem:[%s4042_s2 + $0xe4] ss:$16 sps:$4 sm:$0xff]  }
 0x29d   :  { %1253 = vmatpush1.bf16.msra.mxu0 %v3018_v31  ;;  %1296 = vmatpush1.bf16.msra.mxu1 %v3058_v38  ;;  %v3584_v31 = vld [vmem:[%s4042_s2 + $0xec] ss:$16 sps:$4 sm:$0xff]  }
 0x29e   :  { %1254 = vmatprep.subr.bf16.mxu0 %v3040_v35  ;;  %1297 = vmatprep.subr.bf16.mxu1 %v3082_v42  ;;  %v4116_v42 = vld [vmem:[#allocation13_spill] sm:$0xff] }
 0x2a1   :  { %1255 = vmatpush1.bf16.msra.mxu0 %v3046_v36  ;;  %1298 = vmatpush1.bf16.msra.mxu1 %v3088_v43  ;;  %v4115_v36 = vld [vmem:[#allocation11_spill] sm:$0xff]  ;;  %v348_v43 = vadd.f32 %v4116_v42, %v3369_v53 }
 0x2a2   :  { %1256 = vmatprep.subr.bf16.mxu0 %v3072_v40  ;;  %1299 = vmatprep.subr.bf16.mxu1 %v3096_v44  ;;  %v346_v37 = vadd.f32 %v4115_v36, %v3371_v56 }
 0x2a5   :  { %1257 = vmatpush1.bf16.msra.mxu0 %v3077_v41  ;;  %1300 = vmatpush1.bf16.msra.mxu1 %v3101_v45 }
 0x2a6   :  { %1395 = vmatprep.subr.bf16.mxu0 %v3578_v30  ;;  %1438 = vmatprep.subr.bf16.mxu1 %v3584_v31 }
 0x348   :  { %v1123_v35 = vpop.f32.mrf.mxu0  ;;  %v1166_v40 = vpop.f32.mrf.mxu1 }
 0x349   :  { %v1175_v38 = vadd.f32 %v1123_v35, %v344_v33  ;;  %v1177_v26 = vadd.f32 %v1166_v40, %v509_v22 }
 0x34a   :  { %v1125_v41 = vpop.f32.mrf.mxu0  ;;  %v1168_v59 = vpop.f32.mrf.mxu1 }
 0x34b   :  { %v2274_v44 = vmul.f32 -1.442695, %v1175_v38  ;;  %v1176_v45 = vadd.f32 %v1125_v41, %v346_v37  ;;  %v1178_v20 = vadd.f32 %v1168_v59, %v511_v19 }
 0x34c   :  { %v1127_v6 = vpop.f32.mrf.mxu0  ;;  %v1170_v15 = vpop.f32.mrf.mxu1 }
 0x34d   :  { %2557 = vpow2.f32 %v2274_v44  ;;  %v2276_v54 = vmul.f32 -1.442695, %v1176_v45  ;;  %v1179_v55 = vadd.f32 %v1127_v6, %v348_v43  ;;  %v2278_v34 = vmul.f32 -1.442695, %v1178_v20 }
 0x34e   :  { %v1129_v11 = vpop.f32.mrf.mxu0  ;;  %v1172_v23 = vpop.f32.mrf.mxu1  ;;  %v1181_v39 = vadd.f32 %v1170_v15, %v513_v29  ;;  %v3665_v29 = vld [vmem:[%s4042_s2 + $0x48] ss:$16 sps:$4 sm:$0xff]  }
 0x34f   :  { %2559 = vpow2.f32 %v2276_v54  ;;  %v2275_v12 = vmul.f32 -1.442695, %v1179_v55  ;;  %v1180_v13 = vadd.f32 %v1129_v11, %v350_v58  ;;  %v1182_v3 = vadd.f32 %v1172_v23, %v515_v24  ;;  %v3647_v24 = vld [vmem:[%s4042_s2 + $0x44] ss:$16 sps:$4 sm:$0xff]  }
 0x351   :  { %2561 = vpow2.f32 %v2275_v12  ;;  %v2277_v17 = vmul.f32 -1.442695, %v1180_v13  ;;  %v2279_v33 = vmul.f32 -1.442695, %v1182_v3  ;;  %v3677_v3 = vld [vmem:[%s4042_s2 + $0x2c] ss:$16 sps:$4 sm:$0xff]  }
 0x353   :  { %2563 = vpow2.f32 %v2277_v17 }
 0x354   :  { %2565 = vtanh.f32 %v1177_v26  ;;  %v3653_v26 = vld [vmem:[%s4042_s2 + $0x4c] ss:$16 sps:$4 sm:$0xff]  }
 0x355   :  { %2567 = vpow2.f32 %v2278_v34  ;;  %v3671_v34 = vld [vmem:[%s4042_s2 + $0x24] ss:$16 sps:$4 sm:$0xff]  }
 0x35a   :  { %v2558_v5 = vpop.eup %2557 }
 0x35b   :  { %v1189_v7 = vadd.f32 1.0, %v2558_v5  ;;  %v3683_v5 = vld [vmem:[%s4042_s2 + $0x20] ss:$16 sps:$4 sm:$0xff]  }
 0x35c   :  { %v2560_v32 = vpop.eup %2559 }
 0x35d   :  { %2569 = vrcp.f32 %v1189_v7  ;;  %v1201_v35 = vadd.f32 1.0, %v2560_v32  ;;  %v3695_v7 = vld [vmem:[%s4042_s2 + $0x4] ss:$16 sps:$4 sm:$0xff]   ;;  %v3701_v32 = vld [vmem:[%s4042_s2 + $0xc] ss:$16 sps:$4 sm:$0xff]  }
 0x35e   :  { %v2562_v36 = vpop.eup %2561  ;;  %2571 = vtanh.f32 %v1181_v39  ;;  %v3689_v39 = vld [vmem:[%s4042_s2 + $0x28] ss:$16 sps:$4 sm:$0xff]  }
 0x35f   :  { %2573 = vrcp.f32 %v1201_v35  ;;  %v1190_v37 = vadd.f32 1.0, %v2562_v36  ;;  %v3713_v35 = vld [vmem:[%s4042_s2 + $0x8] ss:$16 sps:$4 sm:$0xff]  }
 0x360   :  { %v2564_v38 = vpop.eup %2563  ;;  %2575 = vpow2.f32 %v2279_v33  ;;  %v3707_v33 = vld [vmem:[%s4042_s2] ss:$16 sps:$4 sm:$0xff]   ;;  %v4122_v36 = vld [vmem:[#allocation17_spill] sm:$0xff] }
 0x361   :  { %2577 = vrcp.f32 %v1190_v37  ;;  %v1202_v40 = vadd.f32 1.0, %v2564_v38  ;;  %v2566_v41 = vpop.eup %2565  ;;  %v354_v37 = vadd.f32 %v4122_v36, %v3369_v53 }
 0x362   :  { %v2568_v42 = vpop.eup %2567 }
 0x363   :  { %2579 = vrcp.f32 %v1202_v40  ;;  %v1215_v59 = vadd.f32 1.0, %v2568_v42  ;;  %v4123_v40 = vld [vmem:[#allocation19_spill] sm:$0xff] }
 0x365   :  { %2581 = vrcp.f32 %v1215_v59  ;;  %v4125_v59 = vld [vmem:[#allocation23_spill] sm:$0xff] }
 0x36a   :  { %v2570_v43 = vpop.eup %2569 }
 0x36b   :  { %v2572_v44 = vpop.eup %2571  ;;  %v1223_v45 = vmul.f32 %v2570_v43, %v2566_v41  ;;  %v356_v41 = vadd.f32 %v4123_v40, %v3371_v56 }
 0x36c   :  { %v2574_v6 = vpop.eup %2573 }
 0x36d   :  { %v2576_v61 = vpop.eup %2575  ;;  %v1221_v58 = vmul.f32 %v2574_v6, %v3453_v10 }
 0x36e   :  { %v2578_v54 = vpop.eup %2577  ;;  %v1216_v13 = vadd.f32 1.0, %v2576_v61 }
 0x36f   :  { %v3604_v55 = vadd.f32 %v1223_v45, %v1221_v58  ;;  %v1224_v11 = vmul.f32 %v2578_v54, %v2572_v44  ;;  %v4124_v45 = vld [vmem:[#allocation21_spill] sm:$0xff] }
 0x370   :  { %v2580_v12 = vpop.eup %2579  ;;  %v358_v6 = vadd.f32 %v4124_v45, %v3369_v53  ;;  %v4129_v45 = vld [vmem:[#allocation22_spill] sm:$0xff] }
 0x371   :  { %v1222_v15 = vmul.f32 %v2580_v12, %v3456_v27  ;;  %2583 = vtanh.f32 %v3604_v55  ;;  %v3634_v27 = vld [vmem:[%s4042_s2 + $0x6c] ss:$16 sps:$4 sm:$0xff]  }
 0x372   :  { %2585 = vrcp.f32 %v1216_v13  ;;  %v2582_v18 = vpop.eup %2581 }
 0x373   :  { %v3607_v17 = vadd.f32 %v1224_v11, %v1222_v15  ;;  %v360_v11 = vadd.f32 %v4125_v59, %v3371_v56 }
 0x375   :  { %2587 = vtanh.f32 %v3607_v17 }
 0x37e   :  { %v2584_v19 = vpop.eup %2583 }
 0x37f   :  { %v2586_v10 = vpop.eup %2585  ;;  %v1229_v21 = vmul.f32 %v2584_v19, %v2582_v18 }
 0x382   :  { %v2588_v20 = vpop.eup %2587 }
 0x383   :  { %v1230_v22 = vmul.f32 %v2588_v20, %v2586_v10 }
 0x385   :  { %v1231_v23 = vpack.c.bf16 %v1230_v22, %v1229_v21  ;;  %v4126_v22 = vld [vmem:[#allocation20_spill] sm:$0xff] }
 0x387   :  { %2408 = vst [vmem:[%s4044_s4 + $0x10] sm:$0xff] %v1231_v23   ;;  %1275 = vmatmul.mubr.bf16.vlgmr.msra.gmra.mxu0 %v1231_v23  ;;  %1318 = vmatmul.mubr.bf16.vlgmr.msra.gmra.mxu1 %v1231_v23  ;;  %v521_v23 = vadd.f32 %v4126_v22, %v3381_v46 }
 0x388   :  { %1396 = vmatpush1.bf16.msra.mxu0 %v3466_v16  ;;  %1439 = vmatpush1.bf16.msra.mxu1 %v3472_v63 }
 0x389   :  { %1397 = vmatprep.subr.bf16.mxu0 %v3478_v60  ;;  %1440 = vmatprep.subr.bf16.mxu1 %v3484_v57 }
 0x38a   :  { %1427 = vmatprep.mubr.bf16.mxu0 %v4108_v2  ;;  %1470 = vmatprep.mubr.bf16.mxu1 %v4108_v2 }
 0x38c   :  { %1398 = vmatpush1.bf16.msra.mxu0 %v3492_v49  ;;  %1441 = vmatpush1.bf16.msra.mxu1 %v3498_v62 }
 0x38d   :  { %1399 = vmatprep.subr.bf16.mxu0 %v3504_v47  ;;  %1442 = vmatprep.subr.bf16.mxu1 %v3510_v1 }
 0x390   :  { %1400 = vmatpush1.bf16.msra.mxu0 %v3516_v0  ;;  %1443 = vmatpush1.bf16.msra.mxu1 %v3522_v48 }
 0x391   :  { %1401 = vmatprep.subr.bf16.mxu0 %v3528_v8  ;;  %1444 = vmatprep.subr.bf16.mxu1 %v3534_v25 }
 0x394   :  { %1402 = vmatpush1.bf16.msra.mxu0 %v3540_v50  ;;  %1445 = vmatpush1.bf16.msra.mxu1 %v3546_v51 }
 0x395   :  { %1403 = vmatprep.subr.bf16.mxu0 %v3552_v52  ;;  %1446 = vmatprep.subr.bf16.mxu1 %v3634_v27 }
 0x398   :  { %1404 = vmatpush1.bf16.msra.mxu0 %v3559_v4  ;;  %1447 = vmatpush1.bf16.msra.mxu1 %v3641_v14 }
 0x399   :  { %1405 = vmatprep.subr.bf16.mxu0 %v3647_v24  ;;  %1448 = vmatprep.subr.bf16.mxu1 %v3653_v26 }
 0x39c   :  { %1406 = vmatpush1.bf16.msra.mxu0 %v3659_v28  ;;  %1449 = vmatpush1.bf16.msra.mxu1 %v3665_v29 }
 0x39d   :  { %1407 = vmatprep.subr.bf16.mxu0 %v3671_v34  ;;  %1450 = vmatprep.subr.bf16.mxu1 %v3677_v3 }
 0x3a0   :  { %1408 = vmatpush1.bf16.msra.mxu0 %v3683_v5  ;;  %1451 = vmatpush1.bf16.msra.mxu1 %v3689_v39 }
 0x3a1   :  { %1409 = vmatprep.subr.bf16.mxu0 %v3695_v7  ;;  %1452 = vmatprep.subr.bf16.mxu1 %v3701_v32 }
 0x3a4   :  { %1410 = vmatpush1.bf16.msra.mxu0 %v3707_v33  ;;  %1453 = vmatpush1.bf16.msra.mxu1 %v3713_v35 }
 0x3a5   :  { %1548 = vmatprep.subr.bf16.mxu0 %v3578_v30  ;;  %1591 = vmatprep.subr.bf16.mxu1 %v3584_v31 }
 0x447   :  { %v1276_v38 = vpop.f32.mrf.mxu0  ;;  %v1319_v43 = vpop.f32.mrf.mxu1 }
 0x448   :  { %v1328_v42 = vadd.f32 %v1276_v38, %v354_v37  ;;  %v4127_v37 = vld [vmem:[#allocation18_spill] sm:$0xff] }
 0x449   :  { %v1278_v44 = vpop.f32.mrf.mxu0  ;;  %v1321_v13 = vpop.f32.mrf.mxu1  ;;  %v519_v38 = vadd.f32 %v4127_v37, %v3383_v9 }
 0x44a   :  { %v2284_v61 = vmul.f32 -1.442695, %v1328_v42  ;;  %v1329_v58 = vadd.f32 %v1278_v44, %v356_v41  ;;  %v1331_v36 = vadd.f32 %v1321_v13, %v521_v23  ;;  %v4128_v41 = vld [vmem:[#allocation24_spill] sm:$0xff] }
 0x44b   :  { %v1280_v54 = vpop.f32.mrf.mxu0  ;;  %v1323_v20 = vpop.f32.mrf.mxu1  ;;  %v525_v42 = vadd.f32 %v4128_v41, %v3381_v46  ;;  %v1330_v44 = vadd.f32 %v1319_v43, %v519_v38 }
 0x44c   :  { %2589 = vpow2.f32 %v2284_v61  ;;  %v2286_v12 = vmul.f32 -1.442695, %v1329_v58  ;;  %v1332_v15 = vadd.f32 %v1280_v54, %v358_v6  ;;  %v523_v6 = vadd.f32 %v4129_v45, %v3383_v9 }
 0x44d   :  { %v1282_v18 = vpop.f32.mrf.mxu0  ;;  %v1325_v40 = vpop.f32.mrf.mxu1  ;;  %v2288_v61 = vmul.f32 -1.442695, %v1331_v36 }
 0x44e   :  { %2591 = vpow2.f32 %v2286_v12  ;;  %v2285_v19 = vmul.f32 -1.442695, %v1332_v15  ;;  %v1333_v10 = vadd.f32 %v1282_v18, %v360_v11  ;;  %v1335_v58 = vadd.f32 %v1325_v40, %v525_v42 }
 0x44f   :  { %v1334_v59 = vadd.f32 %v1323_v20, %v523_v6 }
 0x450   :  { %2593 = vpow2.f32 %v2285_v19  ;;  %v2287_v21 = vmul.f32 -1.442695, %v1333_v10  ;;  %v2289_v13 = vmul.f32 -1.442695, %v1335_v58 }
 0x452   :  { %2595 = vpow2.f32 %v2287_v21 }
 0x453   :  { %2597 = vtanh.f32 %v1330_v44 }
 0x454   :  { %2599 = vpow2.f32 %v2288_v61 }
 0x459   :  { %v2590_v54 = vpop.eup %2589 }
 0x45a   :  { %v1342_v11 = vadd.f32 1.0, %v2590_v54 }
 0x45b   :  { %v2592_v12 = vpop.eup %2591 }
 0x45c   :  { %2601 = vrcp.f32 %v1342_v11  ;;  %v1354_v15 = vadd.f32 1.0, %v2592_v12 }
 0x45d   :  { %v2594_v18 = vpop.eup %2593  ;;  %2603 = vtanh.f32 %v1334_v59 }
 0x45e   :  { %2605 = vrcp.f32 %v1354_v15  ;;  %v1343_v19 = vadd.f32 1.0, %v2594_v18 }
 0x45f   :  { %v2596_v10 = vpop.eup %2595  ;;  %2607 = vpow2.f32 %v2289_v13 }
 0x460   :  { %2609 = vrcp.f32 %v1343_v19  ;;  %v1355_v43 = vadd.f32 1.0, %v2596_v10  ;;  %v2598_v21 = vpop.eup %2597 }
 0x461   :  { %v2600_v22 = vpop.eup %2599 }
 0x462   :  { %2611 = vrcp.f32 %v1355_v43  ;;  %v1368_v42 = vadd.f32 1.0, %v2600_v22  ;;  %v4131_v43 = vld [vmem:[#allocation27_spill] sm:$0xff] }
 0x464   :  { %2613 = vrcp.f32 %v1368_v42  ;;  %v4133_v42 = vld [vmem:[#allocation31_spill] sm:$0xff] }
 0x469   :  { %v2602_v23 = vpop.eup %2601 }
 0x46a   :  { %v2604_v20 = vpop.eup %2603  ;;  %v1376_v36 = vmul.f32 %v2602_v23, %v2598_v21  ;;  %v366_v21 = vadd.f32 %v4131_v43, %v3371_v56 }
 0x46b   :  { %v2606_v37 = vpop.eup %2605 }
 0x46c   :  { %v2608_v38 = vpop.eup %2607  ;;  %v1374_v40 = vmul.f32 %v2606_v37, %v3604_v55 }
 0x46d   :  { %v2610_v41 = vpop.eup %2609  ;;  %v1369_v61 = vadd.f32 1.0, %v2608_v38 }
 0x46e   :  { %v3735_v44 = vadd.f32 %v1376_v36, %v1374_v40  ;;  %v1377_v45 = vmul.f32 %v2610_v41, %v2604_v20  ;;  %v4132_v36 = vld [vmem:[#allocation29_spill] sm:$0xff] }
 0x46f   :  { %v2612_v6 = vpop.eup %2611  ;;  %v368_v37 = vadd.f32 %v4132_v36, %v3369_v53  ;;  %v4137_v36 = vld [vmem:[#allocation30_spill] sm:$0xff] }
 0x470   :  { %v1375_v58 = vmul.f32 %v2612_v6, %v3607_v17  ;;  %2615 = vtanh.f32 %v3735_v44  ;;  %v4130_v17 = vld [vmem:[#allocation25_spill] sm:$0xff] }
 0x471   :  { %2617 = vrcp.f32 %v1369_v61  ;;  %v2614_v59 = vpop.eup %2613  ;;  %v364_v19 = vadd.f32 %v4130_v17, %v3369_v53 }
 0x472   :  { %v3738_v54 = vadd.f32 %v1377_v45, %v1375_v58  ;;  %v370_v45 = vadd.f32 %v4133_v42, %v3371_v56 }
 0x474   :  { %2619 = vtanh.f32 %v3738_v54 }
 0x47d   :  { %v2616_v11 = vpop.eup %2615 }
 0x47e   :  { %v2618_v55 = vpop.eup %2617  ;;  %v1382_v13 = vmul.f32 %v2616_v11, %v2614_v59 }
 0x481   :  { %v2620_v12 = vpop.eup %2619 }
 0x482   :  { %v1383_v15 = vmul.f32 %v2620_v12, %v2618_v55 }
 0x484   :  { %v1384_v18 = vpack.c.bf16 %v1383_v15, %v1382_v13  ;;  %v4134_v15 = vld [vmem:[#allocation28_spill] sm:$0xff] }
 0x486   :  { %2409 = vst [vmem:[%s4044_s4 + $0x18] sm:$0xff] %v1384_v18   ;;  %1428 = vmatmul.mubr.bf16.vlgmr.msra.gmra.mxu0 %v1384_v18  ;;  %1471 = vmatmul.mubr.bf16.vlgmr.msra.gmra.mxu1 %v1384_v18  ;;  %v531_v18 = vadd.f32 %v4134_v15, %v3381_v46 }
 0x487   :  { %1549 = vmatpush1.bf16.msra.mxu0 %v3466_v16  ;;  %1592 = vmatpush1.bf16.msra.mxu1 %v3472_v63 }
 0x488   :  { %1550 = vmatprep.subr.bf16.mxu0 %v3478_v60  ;;  %1593 = vmatprep.subr.bf16.mxu1 %v3484_v57 }
 0x489   :  { %1580 = vmatprep.mubr.bf16.mxu0 %v4108_v2  ;;  %1623 = vmatprep.mubr.bf16.mxu1 %v4108_v2 }
 0x48b   :  { %1551 = vmatpush1.bf16.msra.mxu0 %v3492_v49  ;;  %1594 = vmatpush1.bf16.msra.mxu1 %v3498_v62 }
 0x48c   :  { %1552 = vmatprep.subr.bf16.mxu0 %v3504_v47  ;;  %1595 = vmatprep.subr.bf16.mxu1 %v3510_v1 }
 0x48f   :  { %1553 = vmatpush1.bf16.msra.mxu0 %v3516_v0  ;;  %1596 = vmatpush1.bf16.msra.mxu1 %v3522_v48 }
 0x490   :  { %1554 = vmatprep.subr.bf16.mxu0 %v3528_v8  ;;  %1597 = vmatprep.subr.bf16.mxu1 %v3534_v25 }
 0x493   :  { %1555 = vmatpush1.bf16.msra.mxu0 %v3540_v50  ;;  %1598 = vmatpush1.bf16.msra.mxu1 %v3546_v51 }
 0x494   :  { %1556 = vmatprep.subr.bf16.mxu0 %v3552_v52  ;;  %1599 = vmatprep.subr.bf16.mxu1 %v3634_v27 }
 0x497   :  { %1557 = vmatpush1.bf16.msra.mxu0 %v3559_v4  ;;  %1600 = vmatpush1.bf16.msra.mxu1 %v3641_v14 }
 0x498   :  { %1558 = vmatprep.subr.bf16.mxu0 %v3647_v24  ;;  %1601 = vmatprep.subr.bf16.mxu1 %v3653_v26 }
 0x49b   :  { %1559 = vmatpush1.bf16.msra.mxu0 %v3659_v28  ;;  %1602 = vmatpush1.bf16.msra.mxu1 %v3665_v29 }
 0x49c   :  { %1560 = vmatprep.subr.bf16.mxu0 %v3671_v34  ;;  %1603 = vmatprep.subr.bf16.mxu1 %v3677_v3 }
 0x49f   :  { %1561 = vmatpush1.bf16.msra.mxu0 %v3683_v5  ;;  %1604 = vmatpush1.bf16.msra.mxu1 %v3689_v39 }
 0x4a0   :  { %1562 = vmatprep.subr.bf16.mxu0 %v3695_v7  ;;  %1605 = vmatprep.subr.bf16.mxu1 %v3701_v32 }
 0x4a3   :  { %1563 = vmatpush1.bf16.msra.mxu0 %v3707_v33  ;;  %1606 = vmatpush1.bf16.msra.mxu1 %v3713_v35 }
 0x4a4   :  { %1701 = vmatprep.subr.bf16.mxu0 %v3578_v30  ;;  %1744 = vmatprep.subr.bf16.mxu1 %v3584_v31 }
 0x546   :  { %v1429_v10 = vpop.f32.mrf.mxu0  ;;  %v1472_v23 = vpop.f32.mrf.mxu1 }
 0x547   :  { %v1481_v22 = vadd.f32 %v1429_v10, %v364_v19  ;;  %v4135_v19 = vld [vmem:[#allocation26_spill] sm:$0xff] }
 0x548   :  { %v1431_v20 = vpop.f32.mrf.mxu0  ;;  %v1474_v61 = vpop.f32.mrf.mxu1  ;;  %v529_v10 = vadd.f32 %v4135_v19, %v3383_v9 }
 0x549   :  { %v2294_v38 = vmul.f32 -1.442695, %v1481_v22  ;;  %v1482_v40 = vadd.f32 %v1431_v20, %v366_v21  ;;  %v1484_v17 = vadd.f32 %v1474_v61, %v531_v18  ;;  %v4136_v21 = vld [vmem:[#allocation32_spill] sm:$0xff] }
 0x54a   :  { %v1433_v41 = vpop.f32.mrf.mxu0  ;;  %v1476_v12 = vpop.f32.mrf.mxu1  ;;  %v535_v22 = vadd.f32 %v4136_v21, %v3381_v46  ;;  %v1483_v20 = vadd.f32 %v1472_v23, %v529_v10 }
 0x54b   :  { %2621 = vpow2.f32 %v2294_v38  ;;  %v2296_v6 = vmul.f32 -1.442695, %v1482_v40  ;;  %v1485_v58 = vadd.f32 %v1433_v41, %v368_v37  ;;  %v533_v37 = vadd.f32 %v4137_v36, %v3383_v9 }
 0x54c   :  { %v1435_v59 = vpop.f32.mrf.mxu0  ;;  %v1478_v43 = vpop.f32.mrf.mxu1  ;;  %v2298_v38 = vmul.f32 -1.442695, %v1484_v17 }
 0x54d   :  { %2623 = vpow2.f32 %v2296_v6  ;;  %v2295_v11 = vmul.f32 -1.442695, %v1485_v58  ;;  %v1486_v55 = vadd.f32 %v1435_v59, %v370_v45  ;;  %v1488_v40 = vadd.f32 %v1478_v43, %v535_v22 }
 0x54e   :  { %v1487_v42 = vadd.f32 %v1476_v12, %v533_v37 }
 0x54f   :  { %2625 = vpow2.f32 %v2295_v11  ;;  %v2297_v13 = vmul.f32 -1.442695, %v1486_v55  ;;  %v2299_v61 = vmul.f32 -1.442695, %v1488_v40 }
 0x551   :  { %2627 = vpow2.f32 %v2297_v13 }
 0x552   :  { %2629 = vtanh.f32 %v1483_v20 }
 0x553   :  { %2631 = vpow2.f32 %v2298_v38 }
 0x558   :  { %v2622_v41 = vpop.eup %2621 }
 0x559   :  { %v1495_v45 = vadd.f32 1.0, %v2622_v41 }
 0x55a   :  { %v2624_v6 = vpop.eup %2623 }
 0x55b   :  { %2633 = vrcp.f32 %v1495_v45  ;;  %v1507_v58 = vadd.f32 1.0, %v2624_v6 }
 0x55c   :  { %v2626_v59 = vpop.eup %2625  ;;  %2635 = vtanh.f32 %v1487_v42 }
 0x55d   :  { %2637 = vrcp.f32 %v1507_v58  ;;  %v1496_v11 = vadd.f32 1.0, %v2626_v59 }
 0x55e   :  { %v2628_v55 = vpop.eup %2627  ;;  %2639 = vpow2.f32 %v2299_v61 }
 0x55f   :  { %2641 = vrcp.f32 %v1496_v11  ;;  %v1508_v23 = vadd.f32 1.0, %v2628_v55  ;;  %v2630_v13 = vpop.eup %2629 }
 0x560   :  { %v2632_v15 = vpop.eup %2631 }
 0x561   :  { %2643 = vrcp.f32 %v1508_v23  ;;  %v1521_v22 = vadd.f32 1.0, %v2632_v15  ;;  %v4139_v23 = vld [vmem:[#allocation35_spill] sm:$0xff] }
 0x563   :  { %2645 = vrcp.f32 %v1521_v22  ;;  %v4141_v22 = vld [vmem:[#allocation39_spill] sm:$0xff] }
 0x568   :  { %v2634_v18 = vpop.eup %2633 }
 0x569   :  { %v2636_v12 = vpop.eup %2635  ;;  %v1529_v17 = vmul.f32 %v2634_v18, %v2630_v13  ;;  %v376_v13 = vadd.f32 %v4139_v23, %v3371_v56 }
 0x56a   :  { %v2638_v19 = vpop.eup %2637 }
 0x56b   :  { %v2640_v10 = vpop.eup %2639  ;;  %v1527_v43 = vmul.f32 %v2638_v19, %v3735_v44 }
 0x56c   :  { %v2642_v21 = vpop.eup %2641  ;;  %v1522_v38 = vadd.f32 1.0, %v2640_v10 }
 0x56d   :  { %v3796_v20 = vadd.f32 %v1529_v17, %v1527_v43  ;;  %v1530_v36 = vmul.f32 %v2642_v21, %v2636_v12  ;;  %v4140_v17 = vld [vmem:[#allocation37_spill] sm:$0xff] }
 0x56e   :  { %v2644_v37 = vpop.eup %2643  ;;  %v378_v19 = vadd.f32 %v4140_v17, %v3369_v53  ;;  %v4145_v17 = vld [vmem:[#allocation38_spill] sm:$0xff] }
 0x56f   :  { %v1528_v40 = vmul.f32 %v2644_v37, %v3738_v54  ;;  %2647 = vtanh.f32 %v3796_v20  ;;  %v4138_v54 = vld [vmem:[#allocation33_spill] sm:$0xff] }
 0x570   :  { %2649 = vrcp.f32 %v1522_v38  ;;  %v2646_v42 = vpop.eup %2645  ;;  %v374_v11 = vadd.f32 %v4138_v54, %v3369_v53 }
 0x571   :  { %v3799_v41 = vadd.f32 %v1530_v36, %v1528_v40  ;;  %v380_v36 = vadd.f32 %v4141_v22, %v3371_v56 }
 0x573   :  { %2651 = vtanh.f32 %v3799_v41 }
 0x57c   :  { %v2648_v45 = vpop.eup %2647 }
 0x57d   :  { %v2650_v44 = vpop.eup %2649  ;;  %v1535_v61 = vmul.f32 %v2648_v45, %v2646_v42 }
 0x580   :  { %v2652_v6 = vpop.eup %2651 }
 0x581   :  { %v1536_v58 = vmul.f32 %v2652_v6, %v2650_v44 }
 0x583   :  { %v1537_v59 = vpack.c.bf16 %v1536_v58, %v1535_v61  ;;  %v4142_v58 = vld [vmem:[#allocation36_spill] sm:$0xff] }
 0x585   :  { %2410 = vst [vmem:[%s4044_s4 + $0x20] sm:$0xff] %v1537_v59   ;;  %1581 = vmatmul.mubr.bf16.vlgmr.msra.gmra.mxu0 %v1537_v59  ;;  %1624 = vmatmul.mubr.bf16.vlgmr.msra.gmra.mxu1 %v1537_v59  ;;  %v541_v59 = vadd.f32 %v4142_v58, %v3381_v46 }
 0x586   :  { %1702 = vmatpush1.bf16.msra.mxu0 %v3466_v16  ;;  %1745 = vmatpush1.bf16.msra.mxu1 %v3472_v63 }
 0x587   :  { %1703 = vmatprep.subr.bf16.mxu0 %v3478_v60  ;;  %1746 = vmatprep.subr.bf16.mxu1 %v3484_v57 }
 0x588   :  { %1733 = vmatprep.mubr.bf16.mxu0 %v4108_v2  ;;  %1776 = vmatprep.mubr.bf16.mxu1 %v4108_v2 }
 0x58a   :  { %1704 = vmatpush1.bf16.msra.mxu0 %v3492_v49  ;;  %1747 = vmatpush1.bf16.msra.mxu1 %v3498_v62 }
 0x58b   :  { %1705 = vmatprep.subr.bf16.mxu0 %v3504_v47  ;;  %1748 = vmatprep.subr.bf16.mxu1 %v3510_v1 }
 0x58e   :  { %1706 = vmatpush1.bf16.msra.mxu0 %v3516_v0  ;;  %1749 = vmatpush1.bf16.msra.mxu1 %v3522_v48 }
 0x58f   :  { %1707 = vmatprep.subr.bf16.mxu0 %v3528_v8  ;;  %1750 = vmatprep.subr.bf16.mxu1 %v3534_v25 }
 0x592   :  { %1708 = vmatpush1.bf16.msra.mxu0 %v3540_v50  ;;  %1751 = vmatpush1.bf16.msra.mxu1 %v3546_v51 }
 0x593   :  { %1709 = vmatprep.subr.bf16.mxu0 %v3552_v52  ;;  %1752 = vmatprep.subr.bf16.mxu1 %v3634_v27 }
 0x596   :  { %1710 = vmatpush1.bf16.msra.mxu0 %v3559_v4  ;;  %1753 = vmatpush1.bf16.msra.mxu1 %v3641_v14 }
 0x597   :  { %1711 = vmatprep.subr.bf16.mxu0 %v3647_v24  ;;  %1754 = vmatprep.subr.bf16.mxu1 %v3653_v26 }
 0x59a   :  { %1712 = vmatpush1.bf16.msra.mxu0 %v3659_v28  ;;  %1755 = vmatpush1.bf16.msra.mxu1 %v3665_v29 }
 0x59b   :  { %1713 = vmatprep.subr.bf16.mxu0 %v3671_v34  ;;  %1756 = vmatprep.subr.bf16.mxu1 %v3677_v3 }
 0x59e   :  { %1714 = vmatpush1.bf16.msra.mxu0 %v3683_v5  ;;  %1757 = vmatpush1.bf16.msra.mxu1 %v3689_v39 }
 0x59f   :  { %1715 = vmatprep.subr.bf16.mxu0 %v3695_v7  ;;  %1758 = vmatprep.subr.bf16.mxu1 %v3701_v32 }
 0x5a2   :  { %1716 = vmatpush1.bf16.msra.mxu0 %v3707_v33  ;;  %1759 = vmatpush1.bf16.msra.mxu1 %v3713_v35 }
 0x5a3   :  { %1854 = vmatprep.subr.bf16.mxu0 %v3578_v30  ;;  %1897 = vmatprep.subr.bf16.mxu1 %v3584_v31 }
 0x645   :  { %v1582_v55 = vpop.f32.mrf.mxu0  ;;  %v1625_v18 = vpop.f32.mrf.mxu1 }
 0x646   :  { %v1634_v15 = vadd.f32 %v1582_v55, %v374_v11  ;;  %v4143_v11 = vld [vmem:[#allocation34_spill] sm:$0xff] }
 0x647   :  { %v1584_v12 = vpop.f32.mrf.mxu0  ;;  %v1627_v38 = vpop.f32.mrf.mxu1  ;;  %v539_v55 = vadd.f32 %v4143_v11, %v3383_v9 }
 0x648   :  { %v2304_v10 = vmul.f32 -1.442695, %v1634_v15  ;;  %v1635_v43 = vadd.f32 %v1584_v12, %v376_v13  ;;  %v1637_v54 = vadd.f32 %v1627_v38, %v541_v59  ;;  %v4144_v13 = vld [vmem:[#allocation40_spill] sm:$0xff] }
 0x649   :  { %v1586_v21 = vpop.f32.mrf.mxu0  ;;  %v1629_v6 = vpop.f32.mrf.mxu1  ;;  %v545_v15 = vadd.f32 %v4144_v13, %v3381_v46  ;;  %v1636_v12 = vadd.f32 %v1625_v18, %v539_v55 }
 0x64a   :  { %2653 = vpow2.f32 %v2304_v10  ;;  %v2306_v37 = vmul.f32 -1.442695, %v1635_v43  ;;  %v1638_v40 = vadd.f32 %v1586_v21, %v378_v19  ;;  %v543_v19 = vadd.f32 %v4145_v17, %v3383_v9 }
 0x64b   :  { %v1588_v42 = vpop.f32.mrf.mxu0  ;;  %v1631_v23 = vpop.f32.mrf.mxu1  ;;  %v2308_v10 = vmul.f32 -1.442695, %v1637_v54 }
 0x64c   :  { %2655 = vpow2.f32 %v2306_v37  ;;  %v2305_v45 = vmul.f32 -1.442695, %v1638_v40  ;;  %v1639_v44 = vadd.f32 %v1588_v42, %v380_v36  ;;  %v1641_v43 = vadd.f32 %v1631_v23, %v545_v15 }
 0x64d   :  { %v1640_v22 = vadd.f32 %v1629_v6, %v543_v19 }
 0x64e   :  { %2657 = vpow2.f32 %v2305_v45  ;;  %v2307_v61 = vmul.f32 -1.442695, %v1639_v44  ;;  %v2309_v38 = vmul.f32 -1.442695, %v1641_v43 }
 0x650   :  { %2659 = vpow2.f32 %v2307_v61 }
 0x651   :  { %2661 = vtanh.f32 %v1636_v12 }
 0x652   :  { %2663 = vpow2.f32 %v2308_v10 }
 0x657   :  { %v2654_v21 = vpop.eup %2653 }
 0x658   :  { %v1648_v36 = vadd.f32 1.0, %v2654_v21 }
 0x659   :  { %v2656_v37 = vpop.eup %2655 }
 0x65a   :  { %2665 = vrcp.f32 %v1648_v36  ;;  %v1660_v40 = vadd.f32 1.0, %v2656_v37 }
 0x65b   :  { %v2658_v42 = vpop.eup %2657  ;;  %2667 = vtanh.f32 %v1640_v22 }
 0x65c   :  { %2669 = vrcp.f32 %v1660_v40  ;;  %v1649_v45 = vadd.f32 1.0, %v2658_v42 }
 0x65d   :  { %v2660_v44 = vpop.eup %2659  ;;  %2671 = vpow2.f32 %v2309_v38 }
 0x65e   :  { %2673 = vrcp.f32 %v1649_v45  ;;  %v1661_v18 = vadd.f32 1.0, %v2660_v44  ;;  %v2662_v61 = vpop.eup %2661 }
 0x65f   :  { %v2664_v58 = vpop.eup %2663 }
 0x660   :  { %2675 = vrcp.f32 %v1661_v18  ;;  %v1674_v15 = vadd.f32 1.0, %v2664_v58  ;;  %v4150_v58 = vld [vmem:[#allocation44_spill] sm:$0xff] }
 0x662   :  { %2677 = vrcp.f32 %v1674_v15 }
 0x667   :  { %v2666_v59 = vpop.eup %2665 }
 0x668   :  { %v2668_v6 = vpop.eup %2667  ;;  %v1682_v54 = vmul.f32 %v2666_v59, %v2662_v61  ;;  %v551_v59 = vadd.f32 %v4150_v58, %v3381_v46 }
 0x669   :  { %v2670_v11 = vpop.eup %2669 }
 0x66a   :  { %v2672_v55 = vpop.eup %2671  ;;  %v1680_v23 = vmul.f32 %v2670_v11, %v3796_v20 }
 0x66b   :  { %v2674_v13 = vpop.eup %2673  ;;  %v1675_v10 = vadd.f32 1.0, %v2672_v55 }
 0x66c   :  { %v3857_v12 = vadd.f32 %v1682_v54, %v1680_v23  ;;  %v1683_v17 = vmul.f32 %v2674_v13, %v2668_v6  ;;  %v4151_v54 = vld [vmem:[#allocation42_spill] sm:$0xff]  ;;  %v4152_v23 = vld [vmem:[#allocation48_spill] sm:$0xff] }
 0x66d   :  { %v2676_v19 = vpop.eup %2675  ;;  %v549_v11 = vadd.f32 %v4151_v54, %v3383_v9  ;;  %v555_v13 = vadd.f32 %v4152_v23, %v3381_v46  ;;  %v2815_v54 = vld [vmem:[%s4042_s2 + $0xc4] ss:$16 sps:$4 sm:$0xff]   ;;  %v2818_v23 = vld [vmem:[%s4042_s2 + $0xc8] ss:$16 sps:$4 sm:$0xff]  }
 0x66e   :  { %v1681_v43 = vmul.f32 %v2676_v19, %v3799_v41  ;;  %2679 = vtanh.f32 %v3857_v12 }
 0x66f   :  { %2681 = vrcp.f32 %v1675_v10  ;;  %v2678_v22 = vpop.eup %2677 }
 0x670   :  { %v3860_v21 = vadd.f32 %v1683_v17, %v1681_v43  ;;  %v4153_v17 = vld [vmem:[#allocation46_spill] sm:$0xff] }
 0x671   :  { %v553_v19 = vadd.f32 %v4153_v17, %v3383_v9  ;;  %v2822_v17 = vld [vmem:[%s4042_s2 + $0xa8] ss:$16 sps:$4 sm:$0xff]  }
 0x672   :  { %2683 = vtanh.f32 %v3860_v21 }
 0x67b   :  { %v2680_v36 = vpop.eup %2679 }
 0x67c   :  { %v2682_v20 = vpop.eup %2681  ;;  %v1688_v38 = vmul.f32 %v2680_v36, %v2678_v22 }
 0x67f   :  { %v2684_v37 = vpop.eup %2683 }
 0x680   :  { %v1689_v40 = vmul.f32 %v2684_v37, %v2682_v20 }
 0x682   :  { %v1690_v42 = vpack.c.bf16 %v1689_v40, %v1688_v38 }
 0x684   :  { %2411 = vst [vmem:[%s4044_s4 + $0x28] sm:$0xff] %v1690_v42   ;;  %1734 = vmatmul.mubr.bf16.vlgmr.msra.gmra.mxu0 %v1690_v42  ;;  %1777 = vmatmul.mubr.bf16.vlgmr.msra.gmra.mxu1 %v1690_v42 }
 0x685   :  { %1855 = vmatpush1.bf16.msra.mxu0 %v3466_v16  ;;  %1898 = vmatpush1.bf16.msra.mxu1 %v3472_v63  ;;  %v4146_v16 = vld [vmem:[#allocation41_spill] sm:$0xff] }
 0x686   :  { %1856 = vmatprep.subr.bf16.mxu0 %v3478_v60  ;;  %1899 = vmatprep.subr.bf16.mxu1 %v3484_v57  ;;  %v384_v63 = vadd.f32 %v4146_v16, %v3369_v53  ;;  %v4147_v57 = vld [vmem:[#allocation43_spill] sm:$0xff] }
 0x687   :  { %1886 = vmatprep.mubr.bf16.mxu0 %v4108_v2  ;;  %1929 = vmatprep.mubr.bf16.mxu1 %v4108_v2 }
 0x689   :  { %1857 = vmatpush1.bf16.msra.mxu0 %v3492_v49  ;;  %1900 = vmatpush1.bf16.msra.mxu1 %v3498_v62  ;;  %v386_v49 = vadd.f32 %v4147_v57, %v3371_v56 }
 0x68a   :  { %1858 = vmatprep.subr.bf16.mxu0 %v3504_v47  ;;  %1901 = vmatprep.subr.bf16.mxu1 %v3510_v1 }
 0x68d   :  { %1859 = vmatpush1.bf16.msra.mxu0 %v3516_v0  ;;  %1902 = vmatpush1.bf16.msra.mxu1 %v3522_v48  ;;  %v4148_v0 = vld [vmem:[#allocation45_spill] sm:$0xff] }
 0x68e   :  { %1860 = vmatprep.subr.bf16.mxu0 %v3528_v8  ;;  %1903 = vmatprep.subr.bf16.mxu1 %v3534_v25  ;;  %v388_v48 = vadd.f32 %v4148_v0, %v3369_v53 }
 0x691   :  { %1861 = vmatpush1.bf16.msra.mxu0 %v3540_v50  ;;  %1904 = vmatpush1.bf16.msra.mxu1 %v3546_v51  ;;  %v4149_v51 = vld [vmem:[#allocation47_spill] sm:$0xff] }
 0x692   :  { %1862 = vmatprep.subr.bf16.mxu0 %v3552_v52  ;;  %1905 = vmatprep.subr.bf16.mxu1 %v3634_v27  ;;  %v390_v52 = vadd.f32 %v4149_v51, %v3371_v56 }
 0x695   :  { %1863 = vmatpush1.bf16.msra.mxu0 %v3559_v4  ;;  %1906 = vmatpush1.bf16.msra.mxu1 %v3641_v14 }
 0x696   :  { %1864 = vmatprep.subr.bf16.mxu0 %v3647_v24  ;;  %1907 = vmatprep.subr.bf16.mxu1 %v3653_v26 }
 0x699   :  { %1865 = vmatpush1.bf16.msra.mxu0 %v3659_v28  ;;  %1908 = vmatpush1.bf16.msra.mxu1 %v3665_v29 }
 0x69a   :  { %1866 = vmatprep.subr.bf16.mxu0 %v3671_v34  ;;  %1909 = vmatprep.subr.bf16.mxu1 %v3677_v3 }
 0x69d   :  { %1867 = vmatpush1.bf16.msra.mxu0 %v3683_v5  ;;  %1910 = vmatpush1.bf16.msra.mxu1 %v3689_v39 }
 0x69e   :  { %1868 = vmatprep.subr.bf16.mxu0 %v3695_v7  ;;  %1911 = vmatprep.subr.bf16.mxu1 %v3701_v32 }
 0x6a1   :  { %1869 = vmatpush1.bf16.msra.mxu0 %v3707_v33  ;;  %1912 = vmatpush1.bf16.msra.mxu1 %v3713_v35 }
 0x6a2   :  { %2007 = vmatprep.subr.bf16.mxu0 %v3578_v30  ;;  %2050 = vmatprep.subr.bf16.mxu1 %v3584_v31 }
 0x744   :  { %v1735_v60 = vpop.f32.mrf.mxu0  ;;  %v1778_v47 = vpop.f32.mrf.mxu1 }
 0x745   :  { %v1787_v62 = vadd.f32 %v1735_v60, %v384_v63  ;;  %v1789_v15 = vadd.f32 %v1778_v47, %v549_v11  ;;  %v2816_v11 = vld [vmem:[%s4042_s2 + $0xcc] ss:$16 sps:$4 sm:$0xff]  }
 0x746   :  { %v1737_v1 = vpop.f32.mrf.mxu0  ;;  %v1780_v30 = vpop.f32.mrf.mxu1 }
 0x747   :  { %v2314_v8 = vmul.f32 -1.442695, %v1787_v62  ;;  %v1788_v25 = vadd.f32 %v1737_v1, %v386_v49  ;;  %v1790_v6 = vadd.f32 %v1780_v30, %v551_v59 }
 0x748   :  { %v1739_v50 = vpop.f32.mrf.mxu0  ;;  %v1782_v18 = vpop.f32.mrf.mxu1 }
 0x749   :  { %2685 = vpow2.f32 %v2314_v8  ;;  %v2316_v4 = vmul.f32 -1.442695, %v1788_v25  ;;  %v1791_v31 = vadd.f32 %v1739_v50, %v388_v48  ;;  %v2318_v10 = vmul.f32 -1.442695, %v1790_v6  ;;  %v2814_v6 = vld [vmem:[%s4042_s2 + $0xe8] ss:$16 sps:$4 sm:$0xff]  }
 0x74a   :  { %v1741_v41 = vpop.f32.mrf.mxu0  ;;  %v1784_v55 = vpop.f32.mrf.mxu1  ;;  %v1793_v36 = vadd.f32 %v1782_v18, %v553_v19  ;;  %v2823_v19 = vld [vmem:[%s4042_s2 + $0x84] ss:$16 sps:$4 sm:$0xff]  }
 0x74b   :  { %2687 = vpow2.f32 %v2316_v4  ;;  %v2315_v45 = vmul.f32 -1.442695, %v1791_v31  ;;  %v1792_v44 = vadd.f32 %v1741_v41, %v390_v52  ;;  %v1794_v43 = vadd.f32 %v1784_v55, %v555_v13  ;;  %v2817_v55 = vld [vmem:[%s4042_s2 + $0xc0] ss:$16 sps:$4 sm:$0xff]   ;;  %v2819_v13 = vld [vmem:[%s4042_s2 + $0xa4] ss:$16 sps:$4 sm:$0xff]  }
 0x74d   :  { %2689 = vpow2.f32 %v2315_v45  ;;  %v2317_v61 = vmul.f32 -1.442695, %v1792_v44  ;;  %v2319_v38 = vmul.f32 -1.442695, %v1794_v43  ;;  %v2825_v43 = vld [vmem:[%s4042_s2 + $0x80] ss:$16 sps:$4 sm:$0xff]  }
 0x74f   :  { %2691 = vpow2.f32 %v2317_v61 }
 0x750   :  { %2693 = vtanh.f32 %v1789_v15  ;;  %v2820_v15 = vld [vmem:[%s4042_s2 + $0xac] ss:$16 sps:$4 sm:$0xff]  }
 0x751   :  { %2695 = vpow2.f32 %v2318_v10  ;;  %v2824_v10 = vld [vmem:[%s4042_s2 + $0x8c] ss:$16 sps:$4 sm:$0xff]  }
 0x756   :  { %v2686_v22 = vpop.eup %2685 }
 0x757   :  { %v1801_v20 = vadd.f32 1.0, %v2686_v22  ;;  %v2826_v22 = vld [vmem:[%s4042_s2 + $0x88] ss:$16 sps:$4 sm:$0xff]  }
 0x758   :  { %v2688_v37 = vpop.eup %2687 }
 0x759   :  { %2697 = vrcp.f32 %v1801_v20  ;;  %v1813_v40 = vadd.f32 1.0, %v2688_v37  ;;  %v2828_v20 = vld [vmem:[%s4042_s2 + $0x60] ss:$16 sps:$4 sm:$0xff]  }
 0x75a   :  { %v2690_v42 = vpop.eup %2689  ;;  %2699 = vtanh.f32 %v1793_v36  ;;  %v2827_v36 = vld [vmem:[%s4042_s2 + $0x64] ss:$16 sps:$4 sm:$0xff]  }
 0x75b   :  { %2701 = vrcp.f32 %v1813_v40  ;;  %v1802_v16 = vadd.f32 1.0, %v2690_v42 }
 0x75c   :  { %v2692_v63 = vpop.eup %2691  ;;  %2703 = vpow2.f32 %v2319_v38 }
 0x75d   :  { %2705 = vrcp.f32 %v1802_v16  ;;  %v1814_v60 = vadd.f32 1.0, %v2692_v63  ;;  %v2694_v57 = vpop.eup %2693 }
 0x75e   :  { %v2696_v49 = vpop.eup %2695 }
 0x75f   :  { %2707 = vrcp.f32 %v1814_v60  ;;  %v1827_v50 = vadd.f32 1.0, %v2696_v49 }
 0x761   :  { %2709 = vrcp.f32 %v1827_v50 }
 0x766   :  { %v2698_v62 = vpop.eup %2697 }
 0x767   :  { %v2700_v47 = vpop.eup %2699  ;;  %v1835_v1 = vmul.f32 %v2698_v62, %v2694_v57  ;;  %v4158_v62 = vld [vmem:[#allocation52_spill] sm:$0xff] }
 0x768   :  { %v2702_v0 = vpop.eup %2701 }
 0x769   :  { %v2704_v48 = vpop.eup %2703  ;;  %v1833_v8 = vmul.f32 %v2702_v0, %v3857_v12  ;;  %v4159_v0 = vld [vmem:[#allocation50_spill] sm:$0xff] }
 0x76a   :  { %v2706_v25 = vpop.eup %2705  ;;  %v1828_v30 = vadd.f32 1.0, %v2704_v48  ;;  %v559_v48 = vadd.f32 %v4159_v0, %v3383_v9 }
 0x76b   :  { %v3918_v51 = vadd.f32 %v1835_v1, %v1833_v8  ;;  %v1836_v52 = vmul.f32 %v2706_v25, %v2700_v47  ;;  %v561_v47 = vadd.f32 %v4158_v62, %v3381_v46  ;;  %v4160_v25 = vld [vmem:[#allocation56_spill] sm:$0xff] }
 0x76c   :  { %v2708_v4 = vpop.eup %2707  ;;  %v565_v50 = vadd.f32 %v4160_v25, %v3381_v46 }
 0x76d   :  { %v1834_v31 = vmul.f32 %v2708_v4, %v3860_v21  ;;  %2711 = vtanh.f32 %v3918_v51  ;;  %v2813_v21 = vld [vmem:[%s4042_s2 + $0xe0] ss:$16 sps:$4 sm:$0xff]  }
 0x76e   :  { %2713 = vrcp.f32 %v1828_v30  ;;  %v2710_v45 = vpop.eup %2709  ;;  %v4161_v4 = vld [vmem:[#allocation54_spill] sm:$0xff] }
 0x76f   :  { %v3921_v41 = vadd.f32 %v1836_v52, %v1834_v31  ;;  %v563_v30 = vadd.f32 %v4161_v4, %v3383_v9  ;;  %v4166_v4 = vld [vmem:[#allocation60_spill] sm:$0xff] }
 0x771   :  { %2715 = vtanh.f32 %v3921_v41 }
 0x77a   :  { %v2712_v44 = vpop.eup %2711 }
 0x77b   :  { %v2714_v12 = vpop.eup %2713  ;;  %v1841_v61 = vmul.f32 %v2712_v44, %v2710_v45 }
 0x77e   :  { %v2716_v18 = vpop.eup %2715 }
 0x77f   :  { %v1842_v58 = vmul.f32 %v2716_v18, %v2714_v12 }
 0x781   :  { %v1843_v59 = vpack.c.bf16 %v1842_v58, %v1841_v61 }
 0x783   :  { %2412 = vst [vmem:[%s4044_s4 + $0x30] sm:$0xff] %v1843_v59   ;;  %1887 = vmatmul.mubr.bf16.vlgmr.msra.gmra.mxu0 %v1843_v59  ;;  %1930 = vmatmul.mubr.bf16.vlgmr.msra.gmra.mxu1 %v1843_v59 }
 0x784   :  { %2008 = vmatpush1.bf16.msra.mxu0 %v2813_v21  ;;  %2051 = vmatpush1.bf16.msra.mxu1 %v2814_v6 }
 0x785   :  { %2009 = vmatprep.subr.bf16.mxu0 %v2815_v54  ;;  %2052 = vmatprep.subr.bf16.mxu1 %v2816_v11 }
 0x786   :  { %2039 = vmatprep.mubr.bf16.mxu0 %v4108_v2  ;;  %2082 = vmatprep.mubr.bf16.mxu1 %v4108_v2  ;;  %v2821_v2 = vld [vmem:[%s4042_s2 + $0xa0] ss:$16 sps:$4 sm:$0xff]  }
 0x788   :  { %2010 = vmatpush1.bf16.msra.mxu0 %v2817_v55  ;;  %2053 = vmatpush1.bf16.msra.mxu1 %v2818_v23 }
 0x789   :  { %2011 = vmatprep.subr.bf16.mxu0 %v2819_v13  ;;  %2054 = vmatprep.subr.bf16.mxu1 %v2820_v15 }
 0x78c   :  { %2012 = vmatpush1.bf16.msra.mxu0 %v2821_v2  ;;  %2055 = vmatpush1.bf16.msra.mxu1 %v2822_v17 }
 0x78d   :  { %2013 = vmatprep.subr.bf16.mxu0 %v2823_v19  ;;  %2056 = vmatprep.subr.bf16.mxu1 %v2824_v10 }
 0x790   :  { %2014 = vmatpush1.bf16.msra.mxu0 %v2825_v43  ;;  %2057 = vmatpush1.bf16.msra.mxu1 %v2826_v22 }
 0x791   :  { %2015 = vmatprep.subr.bf16.mxu0 %v2827_v36  ;;  %2058 = vmatprep.subr.bf16.mxu1 %v3634_v27  ;;  %v4154_v27 = vld [vmem:[#allocation49_spill] sm:$0xff] }
 0x794   :  { %2016 = vmatpush1.bf16.msra.mxu0 %v2828_v20  ;;  %2059 = vmatpush1.bf16.msra.mxu1 %v3641_v14  ;;  %v394_v14 = vadd.f32 %v4154_v27, %v3369_v53 }
 0x795   :  { %2017 = vmatprep.subr.bf16.mxu0 %v3647_v24  ;;  %2060 = vmatprep.subr.bf16.mxu1 %v3653_v26  ;;  %v4155_v26 = vld [vmem:[#allocation51_spill] sm:$0xff] }
 0x798   :  { %2018 = vmatpush1.bf16.msra.mxu0 %v3659_v28  ;;  %2061 = vmatpush1.bf16.msra.mxu1 %v3665_v29  ;;  %v396_v28 = vadd.f32 %v4155_v26, %v3371_v56 }
 0x799   :  { %2019 = vmatprep.subr.bf16.mxu0 %v3671_v34  ;;  %2062 = vmatprep.subr.bf16.mxu1 %v3677_v3 }
 0x79c   :  { %2020 = vmatpush1.bf16.msra.mxu0 %v3683_v5  ;;  %2063 = vmatpush1.bf16.msra.mxu1 %v3689_v39  ;;  %v4156_v5 = vld [vmem:[#allocation53_spill] sm:$0xff] }
 0x79d   :  { %2021 = vmatprep.subr.bf16.mxu0 %v3695_v7  ;;  %2064 = vmatprep.subr.bf16.mxu1 %v3701_v32  ;;  %v398_v39 = vadd.f32 %v4156_v5, %v3369_v53 }
 0x7a0   :  { %2022 = vmatpush1.bf16.msra.mxu0 %v3707_v33  ;;  %2065 = vmatpush1.bf16.msra.mxu1 %v3713_v35  ;;  %v4157_v33 = vld [vmem:[#allocation55_spill] sm:$0xff] }
 0x7a1   :  { %v400_v38 = vadd.f32 %v4157_v33, %v3371_v56 }
 0x843   :  { %v1888_v24 = vpop.f32.mrf.mxu0  ;;  %v1931_v34 = vpop.f32.mrf.mxu1 }
 0x844   :  { %v1940_v29 = vadd.f32 %v1888_v24, %v394_v14  ;;  %v1942_v52 = vadd.f32 %v1931_v34, %v559_v48 }
 0x845   :  { %v1890_v3 = vpop.f32.mrf.mxu0  ;;  %v1933_v40 = vpop.f32.mrf.mxu1 }
 0x846   :  { %v2324_v7 = vmul.f32 -1.442695, %v1940_v29  ;;  %v1941_v37 = vadd.f32 %v1890_v3, %v396_v28  ;;  %v1943_v1 = vadd.f32 %v1933_v40, %v561_v47 }
 0x847   :  { %v1892_v32 = vpop.f32.mrf.mxu0  ;;  %v1935_v57 = vpop.f32.mrf.mxu1 }
 0x848   :  { %2717 = vpow2.f32 %v2324_v7  ;;  %v2326_v35 = vmul.f32 -1.442695, %v1941_v37  ;;  %v1944_v42 = vadd.f32 %v1892_v32, %v398_v39  ;;  %v2328_v31 = vmul.f32 -1.442695, %v1943_v1  ;;  %v4163_v32 = vld [vmem:[#allocation59_spill] sm:$0xff] }
 0x849   :  { %v1894_v16 = vpop.f32.mrf.mxu0  ;;  %v1937_v8 = vpop.f32.mrf.mxu1  ;;  %v1946_v12 = vadd.f32 %v1935_v57, %v563_v30  ;;  %v406_v33 = vadd.f32 %v4163_v32, %v3371_v56 }
 0x84a   :  { %2719 = vpow2.f32 %v2326_v35  ;;  %v2325_v63 = vmul.f32 -1.442695, %v1944_v42  ;;  %v1945_v60 = vadd.f32 %v1894_v16, %v400_v38  ;;  %v1947_v45 = vadd.f32 %v1937_v8, %v565_v50  ;;  %v4164_v42 = vld [vmem:[#allocation61_spill] sm:$0xff] }
 0x84b   :  { %v408_v16 = vadd.f32 %v4164_v42, %v3369_v53 }
 0x84c   :  { %2721 = vpow2.f32 %v2325_v63  ;;  %v2327_v49 = vmul.f32 -1.442695, %v1945_v60  ;;  %v2329_v58 = vmul.f32 -1.442695, %v1947_v45 }
 0x84e   :  { %2723 = vpow2.f32 %v2327_v49  ;;  %v4165_v49 = vld [vmem:[#allocation63_spill] sm:$0xff] }
 0x84f   :  { %2725 = vtanh.f32 %v1942_v52  ;;  %v410_v62 = vadd.f32 %v4165_v49, %v3371_v56 }
 0x850   :  { %2727 = vpow2.f32 %v2328_v31  ;;  %v4167_v31 = vld [vmem:[#allocation58_spill] sm:$0xff] }
 0x851   :  { %v569_v45 = vadd.f32 %v4167_v31, %v3383_v9 }
 0x855   :  { %v2718_v44 = vpop.eup %2717 }
 0x856   :  { %v1954_v18 = vadd.f32 1.0, %v2718_v44  ;;  %v4168_v44 = vld [vmem:[#allocation64_spill] sm:$0xff] }
 0x857   :  { %v2720_v61 = vpop.eup %2719 }
 0x858   :  { %2729 = vrcp.f32 %v1954_v18  ;;  %v1966_v59 = vadd.f32 1.0, %v2720_v61  ;;  %v4169_v61 = vld [vmem:[#allocation62_spill] sm:$0xff] }
 0x859   :  { %v2722_v21 = vpop.eup %2721  ;;  %2731 = vtanh.f32 %v1946_v12  ;;  %v575_v12 = vadd.f32 %v4168_v44, %v3381_v46 }
 0x85a   :  { %2733 = vrcp.f32 %v1966_v59  ;;  %v1955_v6 = vadd.f32 1.0, %v2722_v21 }
 0x85b   :  { %v2724_v54 = vpop.eup %2723  ;;  %2735 = vpow2.f32 %v2329_v58  ;;  %v573_v58 = vadd.f32 %v4169_v61, %v3383_v9 }
 0x85c   :  { %2737 = vrcp.f32 %v1955_v6  ;;  %v1967_v11 = vadd.f32 1.0, %v2724_v54  ;;  %v2726_v55 = vpop.eup %2725 }
 0x85d   :  { %v2728_v23 = vpop.eup %2727 }
 0x85e   :  { %2739 = vrcp.f32 %v1967_v11  ;;  %v1980_v22 = vadd.f32 1.0, %v2728_v23 }
 0x860   :  { %2741 = vrcp.f32 %v1980_v22 }
 0x865   :  { %v2730_v13 = vpop.eup %2729 }
 0x866   :  { %v2732_v15 = vpop.eup %2731  ;;  %v1988_v2 = vmul.f32 %v2730_v13, %v2726_v55 }
 0x867   :  { %v2734_v17 = vpop.eup %2733 }
 0x868   :  { %v2736_v19 = vpop.eup %2735  ;;  %v1986_v10 = vmul.f32 %v2734_v17, %v3918_v51 }
 0x869   :  { %v2738_v43 = vpop.eup %2737  ;;  %v1981_v14 = vadd.f32 1.0, %v2736_v19 }
 0x86a   :  { %v4009_v36 = vadd.f32 %v1988_v2, %v1986_v10  ;;  %v1989_v20 = vmul.f32 %v2738_v43, %v2732_v15 }
 0x86b   :  { %v2740_v27 = vpop.eup %2739 }
 0x86c   :  { %v1987_v24 = vmul.f32 %v2740_v27, %v3921_v41  ;;  %2743 = vtanh.f32 %v4009_v36  ;;  %v4162_v41 = vld [vmem:[#allocation57_spill] sm:$0xff] }
 0x86d   :  { %2745 = vrcp.f32 %v1981_v14  ;;  %v2742_v28 = vpop.eup %2741  ;;  %v404_v7 = vadd.f32 %v4162_v41, %v3369_v53  ;;  %v571_v53 = vadd.f32 %v4166_v4, %v3381_v46 }
 0x86e   :  { %v4012_v26 = vadd.f32 %v1989_v20, %v1987_v24 }
 0x870   :  { %2747 = vtanh.f32 %v4012_v26 }
 0x879   :  { %v2744_v29 = vpop.eup %2743 }
 0x87a   :  { %v2746_v51 = vpop.eup %2745  ;;  %v1994_v3 = vmul.f32 %v2744_v29, %v2742_v28 }
 0x87d   :  { %v2748_v34 = vpop.eup %2747 }
 0x87e   :  { %v1995_v5 = vmul.f32 %v2748_v34, %v2746_v51 }
 0x880   :  { %v1996_v39 = vpack.c.bf16 %v1995_v5, %v1994_v3 }
 0x882   :  { %2413 = vst [vmem:[%s4044_s4 + $0x38] sm:$0xff] %v1996_v39   ;;  %2040 = vmatmul.mubr.bf16.vlgmr.msra.gmra.mxu0 %v1996_v39  ;;  %2083 = vmatmul.mubr.bf16.vlgmr.msra.gmra.mxu1 %v1996_v39 }
 0x942   :  { %v2041_v37 = vpop.f32.mrf.mxu0  ;;  %v2084_v35 = vpop.f32.mrf.mxu1 }
 0x943   :  { %v2093_v38 = vadd.f32 %v2041_v37, %v404_v7  ;;  %v2095_v18 = vadd.f32 %v2084_v35, %v569_v45 }
 0x944   :  { %v2043_v40 = vpop.f32.mrf.mxu0  ;;  %v2086_v1 = vpop.f32.mrf.mxu1 }
 0x945   :  { %v2334_v63 = vmul.f32 -1.442695, %v2093_v38  ;;  %v2094_v60 = vadd.f32 %v2043_v40, %v406_v33  ;;  %v2096_v30 = vadd.f32 %v2086_v1, %v571_v53 }
 0x946   :  { %v2045_v57 = vpop.f32.mrf.mxu0  ;;  %v2088_v50 = vpop.f32.mrf.mxu1 }
 0x947   :  { %2749 = vpow2.f32 %v2334_v63  ;;  %v2336_v47 = vmul.f32 -1.442695, %v2094_v60  ;;  %v2097_v0 = vadd.f32 %v2045_v57, %v408_v16  ;;  %v2338_v59 = vmul.f32 -1.442695, %v2096_v30 }
 0x948   :  { %v2047_v48 = vpop.f32.mrf.mxu0  ;;  %v2090_v56 = vpop.f32.mrf.mxu1  ;;  %v2099_v54 = vadd.f32 %v2088_v50, %v573_v58 }
 0x949   :  { %2751 = vpow2.f32 %v2336_v47  ;;  %v2335_v8 = vmul.f32 -1.442695, %v2097_v0  ;;  %v2098_v25 = vadd.f32 %v2047_v48, %v410_v62  ;;  %v2100_v21 = vadd.f32 %v2090_v56, %v575_v12 }
 0x94b   :  { %2753 = vpow2.f32 %v2335_v8  ;;  %v2337_v52 = vmul.f32 -1.442695, %v2098_v25  ;;  %v2339_v23 = vmul.f32 -1.442695, %v2100_v21 }
 0x94d   :  { %2755 = vpow2.f32 %v2337_v52 }
 0x94e   :  { %2757 = vtanh.f32 %v2095_v18 }
 0x94f   :  { %2759 = vpow2.f32 %v2338_v59 }
 0x954   :  { %v2750_v6 = vpop.eup %2749 }
 0x955   :  { %v2107_v11 = vadd.f32 1.0, %v2750_v6 }
 0x956   :  { %v2752_v55 = vpop.eup %2751 }
 0x957   :  { %2761 = vrcp.f32 %v2107_v11  ;;  %v2119_v13 = vadd.f32 1.0, %v2752_v55 }
 0x958   :  { %v2754_v15 = vpop.eup %2753  ;;  %2763 = vtanh.f32 %v2099_v54 }
 0x959   :  { %2765 = vrcp.f32 %v2119_v13  ;;  %v2108_v2 = vadd.f32 1.0, %v2754_v15 }
 0x95a   :  { %v2756_v46 = vpop.eup %2755  ;;  %2767 = vpow2.f32 %v2339_v23 }
 0x95b   :  { %2769 = vrcp.f32 %v2108_v2  ;;  %v2120_v17 = vadd.f32 1.0, %v2756_v46  ;;  %v2758_v9 = vpop.eup %2757 }
 0x95c   :  { %v2760_v19 = vpop.eup %2759 }
 0x95d   :  { %2771 = vrcp.f32 %v2120_v17  ;;  %v2133_v27 = vadd.f32 1.0, %v2760_v19 }
 0x95f   :  { %2773 = vrcp.f32 %v2133_v27 }
 0x964   :  { %v2762_v10 = vpop.eup %2761 }
 0x965   :  { %v2764_v43 = vpop.eup %2763  ;;  %v2141_v22 = vmul.f32 %v2762_v10, %v2758_v9 }
 0x966   :  { %v2766_v20 = vpop.eup %2765 }
 0x967   :  { %v2768_v14 = vpop.eup %2767  ;;  %v2139_v24 = vmul.f32 %v2766_v20, %v4009_v36 }
 0x968   :  { %v2770_v28 = vpop.eup %2769  ;;  %v2134_v3 = vadd.f32 1.0, %v2768_v14 }
 0x969   :  { %v2143_v29 = vadd.f32 %v2141_v22, %v2139_v24  ;;  %v2142_v51 = vmul.f32 %v2770_v28, %v2764_v43 }
 0x96a   :  { %v2772_v34 = vpop.eup %2771 }
 0x96b   :  { %2775 = vtanh.f32 %v2143_v29  ;;  %v2140_v5 = vmul.f32 %v2772_v34, %v4012_v26 }
 0x96c   :  { %2777 = vrcp.f32 %v2134_v3  ;;  %v2774_v41 = vpop.eup %2773 }
 0x96d   :  { %v2144_v39 = vadd.f32 %v2142_v51, %v2140_v5 }
 0x96f   :  { %2779 = vtanh.f32 %v2144_v39 }
 0x978   :  { %v2776_v7 = vpop.eup %2775 }
 0x979   :  { %v2147_v37 = vmul.f32 %v2776_v7, %v2774_v41  ;;  %v2778_v32 = vpop.eup %2777 }
 0x97c   :  { %v2780_v33 = vpop.eup %2779 }
 0x97d   :  { %v2148_v38 = vmul.f32 %v2780_v33, %v2778_v32 }
 0x97f   :  { %v2405_v35 = vpack.c.bf16 %v2148_v38, %v2147_v37 }
 0x981   :  { %2414 = vst [vmem:[%s4044_s4 + $0x40] sm:$0xff] %v2405_v35  }

</bundles_post_ra>
